<compile_context>
chip_gen: v5e
topology: v5e:2x2
jax: 0.10.0
libtpu: 0.0.40
codegen_flags: <defaults>
</compile_context>

<pallas_src>
import math
import jax
import jax.numpy as jnp
from jax.experimental import pallas as pl
from jax.experimental.pallas import tpu as pltpu

# ---------------- model hyper-params (small, consistent with the module) ----
B = 2        # batch
S = 8        # sequence length
D = 32       # d_model
H = 4        # attention heads
DK = D // H  # per-head dim
DFF = 64     # feed-forward hidden dim
EPS = 1e-6   # LayerNormalization eps (torch tutorial uses 10**-6)
NEG_INF = -1e9

_VMEM = pltpu.MemorySpace.VMEM


# ---------------- in-kernel LayerNorm (torch-tutorial semantics) -------------
def _layernorm_kernel(x, gamma, beta):
    """Unbiased (n-1) variance, eps added to std — matches the torch module."""
    mean = jnp.mean(x, axis=-1, keepdims=True)
    xc = x - mean
    var = jnp.sum(xc * xc, axis=-1, keepdims=True) * (1.0 / (D - 1))
    # pl.reciprocal(..., approx=True) would land on the idle EUP slot, but it is
    # an intentional precision trade — kept exact so the 1e-3 check is safe.
    inv = pl.reciprocal(jnp.sqrt(var) + EPS, approx=False)
    return gamma * (xc * inv) + beta


# ---------------- fused kernel: x -> x + MHA(LN1(x)) -> + FFN(LN2(.)) --------
def encoder_block_kernel(x_ref, mask_ref,
                         ln1g_ref, ln1b_ref,
                         wq_ref, bq_ref, wk_ref, bk_ref, wv_ref, bv_ref,
                         wo_ref, bo_ref,
                         ln2g_ref, ln2b_ref,
                         w1_ref, b1_ref, w2_ref, b2_ref,
                         o_ref):
    x = x_ref[...]                                            # (B*S, D) slab

    # ------------- sublayer 1: y = x + SelfAttention(LN1(x), mask) -----------
    xn = _layernorm_kernel(x, ln1g_ref[...], ln1b_ref[...])

    scale = 1.0 / math.sqrt(DK)
    q = (jnp.dot(xn, wq_ref[...], preferred_element_type=jnp.float32)
         + bq_ref[...]) * scale                               # fold 1/sqrt(dk) into Q once
    k = jnp.dot(xn, wk_ref[...], preferred_element_type=jnp.float32) + bk_ref[...]
    v = jnp.dot(xn, wv_ref[...], preferred_element_type=jnp.float32) + bv_ref[...]

    def heads(t, rows):
        # (S, D) rows -> (H, S, DK) head-major stack (no per-head transposes)
        return jnp.stack([t[rows, h * DK:(h + 1) * DK] for h in range(H)], axis=0)

    ctx_per_batch = []
    for b in range(B):                                        # static, tiny (B == 2)
        rows = slice(b * S, (b + 1) * S)
        qh = heads(q, rows)                                   # (H, S, DK)
        kh = heads(k, rows)
        vh = heads(v, rows)

        # All heads in one contraction; no explicit K transpose is materialized.
        s = jnp.einsum('hqd,hkd->hqk', qh, kh,
                       preferred_element_type=jnp.float32)    # (H, S, S)
        s = jnp.where(mask_ref[b] == 0.0, NEG_INF, s)         # one select for all heads
        p = jax.nn.softmax(s, axis=-1)                        # one softmax for all heads
        # TODO(synk): attention-weights dropout omitted (inference / p = 0).
        ctx_per_batch.append(
            jnp.einsum('hqk,hkd->hqd', p, vh,
                       preferred_element_type=jnp.float32))   # (H, S, DK)

    ctx = jnp.concatenate(ctx_per_batch, axis=1)              # (H, B*S, DK)

    # Merge heads back through W_o without a lane concatenate:
    #   att = sum_h ctx[h] @ W_o[h*DK:(h+1)*DK, :]
    att = jnp.dot(ctx[0], wo_ref[0:DK, :], preferred_element_type=jnp.float32)
    for h in range(1, H):
        att = att + jnp.dot(ctx[h], wo_ref[h * DK:(h + 1) * DK, :],
                            preferred_element_type=jnp.float32)
    y = x + att + bo_ref[...]                                 # residual 1 (dropout == identity)

    # ------------- sublayer 2: out = y + FFN(LN2(y)) --------------------------
    yn = _layernorm_kernel(y, ln2g_ref[...], ln2b_ref[...])
    hid = jnp.dot(yn, w1_ref[...], preferred_element_type=jnp.float32) + b1_ref[...]
    hid = jnp.maximum(hid, 0.0)                               # ReLU (inner dropout == identity)
    o_ref[...] = y + jnp.dot(hid, w2_ref[...],
                             preferred_element_type=jnp.float32) + b2_ref[...]


# ---------------- wrapper: single fused pallas_call, empty grid --------------
@jax.jit
def encoder_block(x, src_mask, params):
    # Whole problem (~40 KB of weights + activations) fits in VMEM on every TPU
    # generation (incl. v7x's 64 MiB); one call, one (empty-grid) step, weights
    # loaded once.  Activations presented as a (B*S, D) slab for denser stores.
    n_inputs = 18
    out = pl.pallas_call(
        encoder_block_kernel,
        out_shape=jax.ShapeDtypeStruct((B * S, D), jnp.float32),
        in_specs=[pl.BlockSpec(memory_space=_VMEM)] * n_inputs,
        out_specs=pl.BlockSpec(memory_space=_VMEM),
    )(x.reshape(B * S, D), src_mask,
      params["ln1_g"], params["ln1_b"],
      params["wq"], params["bq"], params["wk"], params["bk"],
      params["wv"], params["bv"], params["wo"], params["bo"],
      params["ln2_g"], params["ln2_b"],
      params["w1"], params["b1"], params["w2"], params["b2"])
    return out.reshape(B, S, D)


# ---------------- pure-JAX reference (mirrors PyTorch semantics) -------------
def _layernorm_ref(x, gamma, beta):
    mean = jnp.mean(x, axis=-1, keepdims=True)
    xc = x - mean
    var = jnp.sum(xc * xc, axis=-1, keepdims=True) / (x.shape[-1] - 1)
    std = jnp.sqrt(var)
    return gamma * xc / (std + EPS) + beta


def encoder_block_ref(x, mask, p):
    # residual 1: self-attention
    xn = _layernorm_ref(x, p["ln1_g"], p["ln1_b"])
    q = xn @ p["wq"] + p["bq"]
    k = xn @ p["wk"] + p["bk"]
    v = xn @ p["wv"] + p["bv"]
    qh = q.reshape(B, S, H, DK).transpose(0, 2, 1, 3)
    kh = k.reshape(B, S, H, DK).transpose(0, 2, 1, 3)
    vh = v.reshape(B, S, H, DK).transpose(0, 2, 1, 3)
    s = jnp.einsum("bhqd,bhkd->bhqk", qh, kh) / math.sqrt(DK)
    s = jnp.where(mask[:, None, :, :] == 0.0, -1e9, s)
    pattn = jax.nn.softmax(s, axis=-1)
    att = jnp.einsum("bhqk,bhkd->bhqd", pattn, vh)
    att = att.transpose(0, 2, 1, 3).reshape(B, S, D)
    x = x + (att @ p["wo"] + p["bo"])
    # residual 2: feed-forward
    xn = _layernorm_ref(x, p["ln2_g"], p["ln2_b"])
    h1 = jnp.maximum(xn @ p["w1"] + p["b1"], 0.0)
    return x + (h1 @ p["w2"] + p["b2"])


# ---------------- deterministic parameter init -------------------------------
def init_params(key):
    ks = jax.random.split(key, 12)

    def lin(k, fin, fout):
        bound = 1.0 / math.sqrt(fin)
        return jax.random.uniform(k, (fin, fout), jnp.float32, -bound, bound)

    p = {
        "ln1_g": jnp.ones((1, D), jnp.float32),
        "ln1_b": jnp.zeros((1, D), jnp.float32),
        "ln2_g": jnp.ones((1, D), jnp.float32),
        "ln2_b": jnp.zeros((1, D), jnp.float32),
        "wq": lin(ks[0], D, D), "bq": jax.random.normal(ks[1], (1, D)) * 0.02,
        "wk": lin(ks[2], D, D), "bk": jax.random.normal(ks[3], (1, D)) * 0.02,
        "wv": lin(ks[4], D, D), "bv": jax.random.normal(ks[5], (1, D)) * 0.02,
        "wo": lin(ks[6], D, D), "bo": jax.random.normal(ks[7], (1, D)) * 0.02,
        "w1": lin(ks[8], D, DFF), "b1": jax.random.normal(ks[9], (1, DFF)) * 0.02,
        "w2": lin(ks[10], DFF, D), "b2": jax.random.normal(ks[11], (1, D)) * 0.02,
    }
    return jax.tree_util.tree_map(lambda a: a.astype(jnp.float32), p)


if __name__ == "__main__":
    key = jax.random.PRNGKey(0)
    kx, kp = jax.random.split(key)
    x = jax.random.normal(kx, (B, S, D), jnp.float32)
    src_mask = jnp.ones((B, 1, S), jnp.float32)
    src_mask = src_mask.at[1, 0, S - 1].set(0.0)   # mask out last token of batch 1
    params = init_params(kp)

    out = jax.block_until_ready(encoder_block(x, src_mask, params))
    ref = encoder_block_ref(x, src_mask, params)

    assert out.shape == (B, S, D)
    assert jnp.allclose(out, ref, atol=1e-3, rtol=1e-3), "mismatch vs reference"

    print("KERNEL_OK")
</pallas_src>

<mosaic_0001>
module attributes {stable_mosaic.version = 11 : i64} {
  func.func @encoder_block_kernel(%arg0: memref<16x32xf32, #tpu.memory_space<vmem>>, %arg1: memref<2x1x8xf32, #tpu.memory_space<vmem>>, %arg2: memref<1x32xf32, #tpu.memory_space<vmem>>, %arg3: memref<1x32xf32, #tpu.memory_space<vmem>>, %arg4: memref<32x32xf32, #tpu.memory_space<vmem>>, %arg5: memref<1x32xf32, #tpu.memory_space<vmem>>, %arg6: memref<32x32xf32, #tpu.memory_space<vmem>>, %arg7: memref<1x32xf32, #tpu.memory_space<vmem>>, %arg8: memref<32x32xf32, #tpu.memory_space<vmem>>, %arg9: memref<1x32xf32, #tpu.memory_space<vmem>>, %arg10: memref<32x32xf32, #tpu.memory_space<vmem>>, %arg11: memref<1x32xf32, #tpu.memory_space<vmem>>, %arg12: memref<1x32xf32, #tpu.memory_space<vmem>>, %arg13: memref<1x32xf32, #tpu.memory_space<vmem>>, %arg14: memref<32x64xf32, #tpu.memory_space<vmem>>, %arg15: memref<1x64xf32, #tpu.memory_space<vmem>>, %arg16: memref<64x32xf32, #tpu.memory_space<vmem>>, %arg17: memref<1x32xf32, #tpu.memory_space<vmem>>, %arg18: memref<16x32xf32, #tpu.memory_space<vmem>>) attributes {dimension_semantics = [], scalar_prefetch = 0 : i64, scratch_operands = 0 : i64, tpu.core_type = #tpu.core_type<tc>} {
    %c0 = arith.constant 0 : index
    %c0_0 = arith.constant 0 : index
    %0 = vector.load %arg0[%c0, %c0_0] : memref<16x32xf32, #tpu.memory_space<vmem>>, vector<16x32xf32>
    %c0_1 = arith.constant 0 : index
    %c0_2 = arith.constant 0 : index
    %1 = vector.load %arg2[%c0_1, %c0_2] : memref<1x32xf32, #tpu.memory_space<vmem>>, vector<1x32xf32>
    %c0_3 = arith.constant 0 : index
    %c0_4 = arith.constant 0 : index
    %2 = vector.load %arg3[%c0_3, %c0_4] : memref<1x32xf32, #tpu.memory_space<vmem>>, vector<1x32xf32>
    %cst = arith.constant dense<0.000000e+00> : vector<16xf32>
    %3 = vector.multi_reduction <add>, %0, %cst [1] : vector<16x32xf32> to vector<16xf32>
    %4 = vector.shape_cast %3 : vector<16xf32> to vector<16x1xf32>
    %cst_5 = arith.constant 3.200000e+01 : f32
    %5 = vector.broadcast %cst_5 : f32 to vector<16x1xf32>
    %6 = arith.divf %4, %5 : vector<16x1xf32>
    %7 = vector.broadcast %6 : vector<16x1xf32> to vector<16x32xf32>
    %8 = arith.subf %0, %7 : vector<16x32xf32>
    %9 = arith.mulf %8, %8 : vector<16x32xf32>
    %cst_6 = arith.constant dense<0.000000e+00> : vector<16xf32>
    %10 = vector.multi_reduction <add>, %9, %cst_6 [1] : vector<16x32xf32> to vector<16xf32>
    %11 = vector.shape_cast %10 : vector<16xf32> to vector<16x1xf32>
    %cst_7 = arith.constant 0.0322580636 : f32
    %12 = vector.broadcast %cst_7 : f32 to vector<16x1xf32>
    %13 = arith.mulf %11, %12 : vector<16x1xf32>
    %14 = math.sqrt %13 : vector<16x1xf32>
    %cst_8 = arith.constant 9.99999997E-7 : f32
    %15 = vector.broadcast %cst_8 : f32 to vector<16x1xf32>
    %16 = arith.addf %14, %15 : vector<16x1xf32>
    %17 = tpu.reciprocal %16 : vector<16x1xf32> -> vector<16x1xf32>
    %18 = vector.broadcast %17 : vector<16x1xf32> to vector<16x32xf32>
    %19 = arith.mulf %8, %18 : vector<16x32xf32>
    %20 = vector.broadcast %1 : vector<1x32xf32> to vector<16x32xf32>
    %21 = arith.mulf %20, %19 : vector<16x32xf32>
    %22 = vector.broadcast %2 : vector<1x32xf32> to vector<16x32xf32>
    %23 = arith.addf %21, %22 : vector<16x32xf32>
    %c0_9 = arith.constant 0 : index
    %c0_10 = arith.constant 0 : index
    %24 = vector.load %arg4[%c0_9, %c0_10] : memref<32x32xf32, #tpu.memory_space<vmem>>, vector<32x32xf32>
    %cst_11 = arith.constant dense<0.000000e+00> : vector<16x32xf32>
    %25 = tpu.matmul %23, %24, %cst_11 {dimension_numbers = #tpu.dot_dimension_numbers<[1], [0], [0], [1], [0, 0, 1, 1], [], []>} : vector<16x32xf32>, vector<32x32xf32>, vector<16x32xf32> -> vector<16x32xf32>
    %c0_12 = arith.constant 0 : index
    %c0_13 = arith.constant 0 : index
    %26 = vector.load %arg5[%c0_12, %c0_13] : memref<1x32xf32, #tpu.memory_space<vmem>>, vector<1x32xf32>
    %27 = vector.broadcast %26 : vector<1x32xf32> to vector<16x32xf32>
    %28 = arith.addf %25, %27 : vector<16x32xf32>
    %cst_14 = arith.constant 0.353553385 : f32
    %29 = vector.broadcast %cst_14 : f32 to vector<16x32xf32>
    %30 = arith.mulf %28, %29 : vector<16x32xf32>
    %c0_15 = arith.constant 0 : index
    %c0_16 = arith.constant 0 : index
    %31 = vector.load %arg6[%c0_15, %c0_16] : memref<32x32xf32, #tpu.memory_space<vmem>>, vector<32x32xf32>
    %cst_17 = arith.constant dense<0.000000e+00> : vector<16x32xf32>
    %32 = tpu.matmul %23, %31, %cst_17 {dimension_numbers = #tpu.dot_dimension_numbers<[1], [0], [0], [1], [0, 0, 1, 1], [], []>} : vector<16x32xf32>, vector<32x32xf32>, vector<16x32xf32> -> vector<16x32xf32>
    %c0_18 = arith.constant 0 : index
    %c0_19 = arith.constant 0 : index
    %33 = vector.load %arg7[%c0_18, %c0_19] : memref<1x32xf32, #tpu.memory_space<vmem>>, vector<1x32xf32>
    %34 = vector.broadcast %33 : vector<1x32xf32> to vector<16x32xf32>
    %35 = arith.addf %32, %34 : vector<16x32xf32>
    %c0_20 = arith.constant 0 : index
    %c0_21 = arith.constant 0 : index
    %36 = vector.load %arg8[%c0_20, %c0_21] : memref<32x32xf32, #tpu.memory_space<vmem>>, vector<32x32xf32>
    %cst_22 = arith.constant dense<0.000000e+00> : vector<16x32xf32>
    %37 = tpu.matmul %23, %36, %cst_22 {dimension_numbers = #tpu.dot_dimension_numbers<[1], [0], [0], [1], [0, 0, 1, 1], [], []>} : vector<16x32xf32>, vector<32x32xf32>, vector<16x32xf32> -> vector<16x32xf32>
    %c0_23 = arith.constant 0 : index
    %c0_24 = arith.constant 0 : index
    %38 = vector.load %arg9[%c0_23, %c0_24] : memref<1x32xf32, #tpu.memory_space<vmem>>, vector<1x32xf32>
    %39 = vector.broadcast %38 : vector<1x32xf32> to vector<16x32xf32>
    %40 = arith.addf %37, %39 : vector<16x32xf32>
    %41 = vector.extract_strided_slice %30 {offsets = [0, 0], sizes = [8, 8], strides = [1, 1]} : vector<16x32xf32> to vector<8x8xf32>
    %42 = vector.extract_strided_slice %30 {offsets = [0, 8], sizes = [8, 8], strides = [1, 1]} : vector<16x32xf32> to vector<8x8xf32>
    %43 = vector.extract_strided_slice %30 {offsets = [0, 16], sizes = [8, 8], strides = [1, 1]} : vector<16x32xf32> to vector<8x8xf32>
    %44 = vector.extract_strided_slice %30 {offsets = [0, 24], sizes = [8, 8], strides = [1, 1]} : vector<16x32xf32> to vector<8x8xf32>
    %45 = vector.shape_cast %41 : vector<8x8xf32> to vector<1x8x8xf32>
    %46 = vector.shape_cast %42 : vector<8x8xf32> to vector<1x8x8xf32>
    %47 = vector.shape_cast %43 : vector<8x8xf32> to vector<1x8x8xf32>
    %48 = vector.shape_cast %44 : vector<8x8xf32> to vector<1x8x8xf32>
    %49 = tpu.concatenate %45, %46, %47, %48 in 0 : vector<1x8x8xf32>, vector<1x8x8xf32>, vector<1x8x8xf32>, vector<1x8x8xf32> -> vector<4x8x8xf32>
    %50 = vector.extract_strided_slice %35 {offsets = [0, 0], sizes = [8, 8], strides = [1, 1]} : vector<16x32xf32> to vector<8x8xf32>
    %51 = vector.extract_strided_slice %35 {offsets = [0, 8], sizes = [8, 8], strides = [1, 1]} : vector<16x32xf32> to vector<8x8xf32>
    %52 = vector.extract_strided_slice %35 {offsets = [0, 16], sizes = [8, 8], strides = [1, 1]} : vector<16x32xf32> to vector<8x8xf32>
    %53 = vector.extract_strided_slice %35 {offsets = [0, 24], sizes = [8, 8], strides = [1, 1]} : vector<16x32xf32> to vector<8x8xf32>
    %54 = vector.shape_cast %50 : vector<8x8xf32> to vector<1x8x8xf32>
    %55 = vector.shape_cast %51 : vector<8x8xf32> to vector<1x8x8xf32>
    %56 = vector.shape_cast %52 : vector<8x8xf32> to vector<1x8x8xf32>
    %57 = vector.shape_cast %53 : vector<8x8xf32> to vector<1x8x8xf32>
    %58 = tpu.concatenate %54, %55, %56, %57 in 0 : vector<1x8x8xf32>, vector<1x8x8xf32>, vector<1x8x8xf32>, vector<1x8x8xf32> -> vector<4x8x8xf32>
    %59 = vector.extract_strided_slice %40 {offsets = [0, 0], sizes = [8, 8], strides = [1, 1]} : vector<16x32xf32> to vector<8x8xf32>
    %60 = vector.extract_strided_slice %40 {offsets = [0, 8], sizes = [8, 8], strides = [1, 1]} : vector<16x32xf32> to vector<8x8xf32>
    %61 = vector.extract_strided_slice %40 {offsets = [0, 16], sizes = [8, 8], strides = [1, 1]} : vector<16x32xf32> to vector<8x8xf32>
    %62 = vector.extract_strided_slice %40 {offsets = [0, 24], sizes = [8, 8], strides = [1, 1]} : vector<16x32xf32> to vector<8x8xf32>
    %63 = vector.shape_cast %59 : vector<8x8xf32> to vector<1x8x8xf32>
    %64 = vector.shape_cast %60 : vector<8x8xf32> to vector<1x8x8xf32>
    %65 = vector.shape_cast %61 : vector<8x8xf32> to vector<1x8x8xf32>
    %66 = vector.shape_cast %62 : vector<8x8xf32> to vector<1x8x8xf32>
    %67 = tpu.concatenate %63, %64, %65, %66 in 0 : vector<1x8x8xf32>, vector<1x8x8xf32>, vector<1x8x8xf32>, vector<1x8x8xf32> -> vector<4x8x8xf32>
    "tpu.trace_start"() <{level = 10 : i32, message = "hqd,hkd->hqk"}> : () -> ()
    %cst_25 = arith.constant dense<0.000000e+00> : vector<4x8x8xf32>
    %68 = tpu.matmul %49, %58, %cst_25 {dimension_numbers = #tpu.dot_dimension_numbers<[2], [2], [1], [1], [0, 0, 0, 1, 1, 1], [0], [0]>} : vector<4x8x8xf32>, vector<4x8x8xf32>, vector<4x8x8xf32> -> vector<4x8x8xf32>
    "tpu.trace_stop"() : () -> ()
    %c0_26 = arith.constant 0 : index
    %c0_27 = arith.constant 0 : index
    %c0_28 = arith.constant 0 : index
    %69 = vector.load %arg1[%c0_26, %c0_27, %c0_28] : memref<2x1x8xf32, #tpu.memory_space<vmem>>, vector<1x1x8xf32>
    %70 = vector.shape_cast %69 : vector<1x1x8xf32> to vector<1x8xf32>
    %cst_29 = arith.constant 0.000000e+00 : f32
    %71 = vector.broadcast %cst_29 : f32 to vector<1x8xf32>
    %72 = arith.cmpf oeq, %70, %71 : vector<1x8xf32>
    %cst_30 = arith.constant -1.000000e+09 : f32
    %73 = vector.shape_cast %72 : vector<1x8xi1> to vector<1x1x8xi1>
    %74 = vector.broadcast %73 : vector<1x1x8xi1> to vector<4x8x8xi1>
    %75 = vector.broadcast %cst_30 : f32 to vector<4x8x8xf32>
    %76 = arith.select %74, %75, %68 : vector<4x8x8xi1>, vector<4x8x8xf32>
    %cst_31 = arith.constant dense<0xFF800000> : vector<4x8xf32>
    %77 = vector.multi_reduction <maximumf>, %76, %cst_31 [2] : vector<4x8x8xf32> to vector<4x8xf32>
    %cst_32 = arith.constant 0xFF800000 : f32
    %78 = vector.broadcast %cst_32 : f32 to vector<4x8xf32>
    %79 = arith.maximumf %78, %77 : vector<4x8xf32>
    %80 = vector.shape_cast %79 : vector<4x8xf32> to vector<4x8x1xf32>
    %81 = vector.broadcast %80 : vector<4x8x1xf32> to vector<4x8x8xf32>
    %82 = arith.subf %76, %81 : vector<4x8x8xf32>
    %83 = math.exp %82 : vector<4x8x8xf32>
    %cst_33 = arith.constant dense<0.000000e+00> : vector<4x8xf32>
    %84 = vector.multi_reduction <add>, %83, %cst_33 [2] : vector<4x8x8xf32> to vector<4x8xf32>
    %85 = vector.shape_cast %84 : vector<4x8xf32> to vector<4x8x1xf32>
    %86 = vector.broadcast %85 : vector<4x8x1xf32> to vector<4x8x8xf32>
    %87 = arith.divf %83, %86 : vector<4x8x8xf32>
    "tpu.trace_start"() <{level = 10 : i32, message = "hqk,hkd->hqd"}> : () -> ()
    %cst_34 = arith.constant dense<0.000000e+00> : vector<4x8x8xf32>
    %88 = tpu.matmul %87, %67, %cst_34 {dimension_numbers = #tpu.dot_dimension_numbers<[2], [1], [1], [2], [0, 0, 0, 1, 1, 2], [0], [0]>} : vector<4x8x8xf32>, vector<4x8x8xf32>, vector<4x8x8xf32> -> vector<4x8x8xf32>
    "tpu.trace_stop"() : () -> ()
    %89 = vector.extract_strided_slice %30 {offsets = [8, 0], sizes = [8, 8], strides = [1, 1]} : vector<16x32xf32> to vector<8x8xf32>
    %90 = vector.extract_strided_slice %30 {offsets = [8, 8], sizes = [8, 8], strides = [1, 1]} : vector<16x32xf32> to vector<8x8xf32>
    %91 = vector.extract_strided_slice %30 {offsets = [8, 16], sizes = [8, 8], strides = [1, 1]} : vector<16x32xf32> to vector<8x8xf32>
    %92 = vector.extract_strided_slice %30 {offsets = [8, 24], sizes = [8, 8], strides = [1, 1]} : vector<16x32xf32> to vector<8x8xf32>
    %93 = vector.shape_cast %89 : vector<8x8xf32> to vector<1x8x8xf32>
    %94 = vector.shape_cast %90 : vector<8x8xf32> to vector<1x8x8xf32>
    %95 = vector.shape_cast %91 : vector<8x8xf32> to vector<1x8x8xf32>
    %96 = vector.shape_cast %92 : vector<8x8xf32> to vector<1x8x8xf32>
    %97 = tpu.concatenate %93, %94, %95, %96 in 0 : vector<1x8x8xf32>, vector<1x8x8xf32>, vector<1x8x8xf32>, vector<1x8x8xf32> -> vector<4x8x8xf32>
    %98 = vector.extract_strided_slice %35 {offsets = [8, 0], sizes = [8, 8], strides = [1, 1]} : vector<16x32xf32> to vector<8x8xf32>
    %99 = vector.extract_strided_slice %35 {offsets = [8, 8], sizes = [8, 8], strides = [1, 1]} : vector<16x32xf32> to vector<8x8xf32>
    %100 = vector.extract_strided_slice %35 {offsets = [8, 16], sizes = [8, 8], strides = [1, 1]} : vector<16x32xf32> to vector<8x8xf32>
    %101 = vector.extract_strided_slice %35 {offsets = [8, 24], sizes = [8, 8], strides = [1, 1]} : vector<16x32xf32> to vector<8x8xf32>
    %102 = vector.shape_cast %98 : vector<8x8xf32> to vector<1x8x8xf32>
    %103 = vector.shape_cast %99 : vector<8x8xf32> to vector<1x8x8xf32>
    %104 = vector.shape_cast %100 : vector<8x8xf32> to vector<1x8x8xf32>
    %105 = vector.shape_cast %101 : vector<8x8xf32> to vector<1x8x8xf32>
    %106 = tpu.concatenate %102, %103, %104, %105 in 0 : vector<1x8x8xf32>, vector<1x8x8xf32>, vector<1x8x8xf32>, vector<1x8x8xf32> -> vector<4x8x8xf32>
    %107 = vector.extract_strided_slice %40 {offsets = [8, 0], sizes = [8, 8], strides = [1, 1]} : vector<16x32xf32> to vector<8x8xf32>
    %108 = vector.extract_strided_slice %40 {offsets = [8, 8], sizes = [8, 8], strides = [1, 1]} : vector<16x32xf32> to vector<8x8xf32>
    %109 = vector.extract_strided_slice %40 {offsets = [8, 16], sizes = [8, 8], strides = [1, 1]} : vector<16x32xf32> to vector<8x8xf32>
    %110 = vector.extract_strided_slice %40 {offsets = [8, 24], sizes = [8, 8], strides = [1, 1]} : vector<16x32xf32> to vector<8x8xf32>
    %111 = vector.shape_cast %107 : vector<8x8xf32> to vector<1x8x8xf32>
    %112 = vector.shape_cast %108 : vector<8x8xf32> to vector<1x8x8xf32>
    %113 = vector.shape_cast %109 : vector<8x8xf32> to vector<1x8x8xf32>
    %114 = vector.shape_cast %110 : vector<8x8xf32> to vector<1x8x8xf32>
    %115 = tpu.concatenate %111, %112, %113, %114 in 0 : vector<1x8x8xf32>, vector<1x8x8xf32>, vector<1x8x8xf32>, vector<1x8x8xf32> -> vector<4x8x8xf32>
    "tpu.trace_start"() <{level = 10 : i32, message = "hqd,hkd->hqk"}> : () -> ()
    %cst_35 = arith.constant dense<0.000000e+00> : vector<4x8x8xf32>
    %116 = tpu.matmul %97, %106, %cst_35 {dimension_numbers = #tpu.dot_dimension_numbers<[2], [2], [1], [1], [0, 0, 0, 1, 1, 1], [0], [0]>} : vector<4x8x8xf32>, vector<4x8x8xf32>, vector<4x8x8xf32> -> vector<4x8x8xf32>
    "tpu.trace_stop"() : () -> ()
    %c1 = arith.constant 1 : index
    %c0_36 = arith.constant 0 : index
    %c0_37 = arith.constant 0 : index
    %117 = vector.load %arg1[%c1, %c0_36, %c0_37] : memref<2x1x8xf32, #tpu.memory_space<vmem>>, vector<1x1x8xf32>
    %118 = vector.shape_cast %117 : vector<1x1x8xf32> to vector<1x8xf32>
    %cst_38 = arith.constant 0.000000e+00 : f32
    %119 = vector.broadcast %cst_38 : f32 to vector<1x8xf32>
    %120 = arith.cmpf oeq, %118, %119 : vector<1x8xf32>
    %cst_39 = arith.constant -1.000000e+09 : f32
    %121 = vector.shape_cast %120 : vector<1x8xi1> to vector<1x1x8xi1>
    %122 = vector.broadcast %121 : vector<1x1x8xi1> to vector<4x8x8xi1>
    %123 = vector.broadcast %cst_39 : f32 to vector<4x8x8xf32>
    %124 = arith.select %122, %123, %116 : vector<4x8x8xi1>, vector<4x8x8xf32>
    %cst_40 = arith.constant dense<0xFF800000> : vector<4x8xf32>
    %125 = vector.multi_reduction <maximumf>, %124, %cst_40 [2] : vector<4x8x8xf32> to vector<4x8xf32>
    %cst_41 = arith.constant 0xFF800000 : f32
    %126 = vector.broadcast %cst_41 : f32 to vector<4x8xf32>
    %127 = arith.maximumf %126, %125 : vector<4x8xf32>
    %128 = vector.shape_cast %127 : vector<4x8xf32> to vector<4x8x1xf32>
    %129 = vector.broadcast %128 : vector<4x8x1xf32> to vector<4x8x8xf32>
    %130 = arith.subf %124, %129 : vector<4x8x8xf32>
    %131 = math.exp %130 : vector<4x8x8xf32>
    %cst_42 = arith.constant dense<0.000000e+00> : vector<4x8xf32>
    %132 = vector.multi_reduction <add>, %131, %cst_42 [2] : vector<4x8x8xf32> to vector<4x8xf32>
    %133 = vector.shape_cast %132 : vector<4x8xf32> to vector<4x8x1xf32>
    %134 = vector.broadcast %133 : vector<4x8x1xf32> to vector<4x8x8xf32>
    %135 = arith.divf %131, %134 : vector<4x8x8xf32>
    "tpu.trace_start"() <{level = 10 : i32, message = "hqk,hkd->hqd"}> : () -> ()
    %cst_43 = arith.constant dense<0.000000e+00> : vector<4x8x8xf32>
    %136 = tpu.matmul %135, %115, %cst_43 {dimension_numbers = #tpu.dot_dimension_numbers<[2], [1], [1], [2], [0, 0, 0, 1, 1, 2], [0], [0]>} : vector<4x8x8xf32>, vector<4x8x8xf32>, vector<4x8x8xf32> -> vector<4x8x8xf32>
    "tpu.trace_stop"() : () -> ()
    %137 = tpu.concatenate %88, %136 in 1 : vector<4x8x8xf32>, vector<4x8x8xf32> -> vector<4x16x8xf32>
    %138 = vector.extract_strided_slice %137 {offsets = [0, 0, 0], sizes = [1, 16, 8], strides = [1, 1, 1]} : vector<4x16x8xf32> to vector<1x16x8xf32>
    %139 = vector.shape_cast %138 : vector<1x16x8xf32> to vector<16x8xf32>
    %c0_44 = arith.constant 0 : index
    %c0_45 = arith.constant 0 : index
    %140 = vector.load %arg10[%c0_44, %c0_45] : memref<32x32xf32, #tpu.memory_space<vmem>>, vector<8x32xf32>
    %cst_46 = arith.constant dense<0.000000e+00> : vector<16x32xf32>
    %141 = tpu.matmul %139, %140, %cst_46 {dimension_numbers = #tpu.dot_dimension_numbers<[1], [0], [0], [1], [0, 0, 1, 1], [], []>} : vector<16x8xf32>, vector<8x32xf32>, vector<16x32xf32> -> vector<16x32xf32>
    %142 = vector.extract_strided_slice %137 {offsets = [1, 0, 0], sizes = [1, 16, 8], strides = [1, 1, 1]} : vector<4x16x8xf32> to vector<1x16x8xf32>
    %143 = vector.shape_cast %142 : vector<1x16x8xf32> to vector<16x8xf32>
    %c8 = arith.constant 8 : index
    %c0_47 = arith.constant 0 : index
    %144 = vector.load %arg10[%c8, %c0_47] : memref<32x32xf32, #tpu.memory_space<vmem>>, vector<8x32xf32>
    %cst_48 = arith.constant dense<0.000000e+00> : vector<16x32xf32>
    %145 = tpu.matmul %143, %144, %cst_48 {dimension_numbers = #tpu.dot_dimension_numbers<[1], [0], [0], [1], [0, 0, 1, 1], [], []>} : vector<16x8xf32>, vector<8x32xf32>, vector<16x32xf32> -> vector<16x32xf32>
    %146 = arith.addf %141, %145 : vector<16x32xf32>
    %147 = vector.extract_strided_slice %137 {offsets = [2, 0, 0], sizes = [1, 16, 8], strides = [1, 1, 1]} : vector<4x16x8xf32> to vector<1x16x8xf32>
    %148 = vector.shape_cast %147 : vector<1x16x8xf32> to vector<16x8xf32>
    %c16 = arith.constant 16 : index
    %c0_49 = arith.constant 0 : index
    %149 = vector.load %arg10[%c16, %c0_49] : memref<32x32xf32, #tpu.memory_space<vmem>>, vector<8x32xf32>
    %cst_50 = arith.constant dense<0.000000e+00> : vector<16x32xf32>
    %150 = tpu.matmul %148, %149, %cst_50 {dimension_numbers = #tpu.dot_dimension_numbers<[1], [0], [0], [1], [0, 0, 1, 1], [], []>} : vector<16x8xf32>, vector<8x32xf32>, vector<16x32xf32> -> vector<16x32xf32>
    %151 = arith.addf %146, %150 : vector<16x32xf32>
    %152 = vector.extract_strided_slice %137 {offsets = [3, 0, 0], sizes = [1, 16, 8], strides = [1, 1, 1]} : vector<4x16x8xf32> to vector<1x16x8xf32>
    %153 = vector.shape_cast %152 : vector<1x16x8xf32> to vector<16x8xf32>
    %c24 = arith.constant 24 : index
    %c0_51 = arith.constant 0 : index
    %154 = vector.load %arg10[%c24, %c0_51] : memref<32x32xf32, #tpu.memory_space<vmem>>, vector<8x32xf32>
    %cst_52 = arith.constant dense<0.000000e+00> : vector<16x32xf32>
    %155 = tpu.matmul %153, %154, %cst_52 {dimension_numbers = #tpu.dot_dimension_numbers<[1], [0], [0], [1], [0, 0, 1, 1], [], []>} : vector<16x8xf32>, vector<8x32xf32>, vector<16x32xf32> -> vector<16x32xf32>
    %156 = arith.addf %151, %155 : vector<16x32xf32>
    %157 = arith.addf %0, %156 : vector<16x32xf32>
    %c0_53 = arith.constant 0 : index
    %c0_54 = arith.constant 0 : index
    %158 = vector.load %arg11[%c0_53, %c0_54] : memref<1x32xf32, #tpu.memory_space<vmem>>, vector<1x32xf32>
    %159 = vector.broadcast %158 : vector<1x32xf32> to vector<16x32xf32>
    %160 = arith.addf %157, %159 : vector<16x32xf32>
    %c0_55 = arith.constant 0 : index
    %c0_56 = arith.constant 0 : index
    %161 = vector.load %arg12[%c0_55, %c0_56] : memref<1x32xf32, #tpu.memory_space<vmem>>, vector<1x32xf32>
    %c0_57 = arith.constant 0 : index
    %c0_58 = arith.constant 0 : index
    %162 = vector.load %arg13[%c0_57, %c0_58] : memref<1x32xf32, #tpu.memory_space<vmem>>, vector<1x32xf32>
    %cst_59 = arith.constant dense<0.000000e+00> : vector<16xf32>
    %163 = vector.multi_reduction <add>, %160, %cst_59 [1] : vector<16x32xf32> to vector<16xf32>
    %164 = vector.shape_cast %163 : vector<16xf32> to vector<16x1xf32>
    %cst_60 = arith.constant 3.200000e+01 : f32
    %165 = vector.broadcast %cst_60 : f32 to vector<16x1xf32>
    %166 = arith.divf %164, %165 : vector<16x1xf32>
    %167 = vector.broadcast %166 : vector<16x1xf32> to vector<16x32xf32>
    %168 = arith.subf %160, %167 : vector<16x32xf32>
    %169 = arith.mulf %168, %168 : vector<16x32xf32>
    %cst_61 = arith.constant dense<0.000000e+00> : vector<16xf32>
    %170 = vector.multi_reduction <add>, %169, %cst_61 [1] : vector<16x32xf32> to vector<16xf32>
    %171 = vector.shape_cast %170 : vector<16xf32> to vector<16x1xf32>
    %cst_62 = arith.constant 0.0322580636 : f32
    %172 = vector.broadcast %cst_62 : f32 to vector<16x1xf32>
    %173 = arith.mulf %171, %172 : vector<16x1xf32>
    %174 = math.sqrt %173 : vector<16x1xf32>
    %cst_63 = arith.constant 9.99999997E-7 : f32
    %175 = vector.broadcast %cst_63 : f32 to vector<16x1xf32>
    %176 = arith.addf %174, %175 : vector<16x1xf32>
    %177 = tpu.reciprocal %176 : vector<16x1xf32> -> vector<16x1xf32>
    %178 = vector.broadcast %177 : vector<16x1xf32> to vector<16x32xf32>
    %179 = arith.mulf %168, %178 : vector<16x32xf32>
    %180 = vector.broadcast %161 : vector<1x32xf32> to vector<16x32xf32>
    %181 = arith.mulf %180, %179 : vector<16x32xf32>
    %182 = vector.broadcast %162 : vector<1x32xf32> to vector<16x32xf32>
    %183 = arith.addf %181, %182 : vector<16x32xf32>
    %c0_64 = arith.constant 0 : index
    %c0_65 = arith.constant 0 : index
    %184 = vector.load %arg14[%c0_64, %c0_65] : memref<32x64xf32, #tpu.memory_space<vmem>>, vector<32x64xf32>
    %cst_66 = arith.constant dense<0.000000e+00> : vector<16x64xf32>
    %185 = tpu.matmul %183, %184, %cst_66 {dimension_numbers = #tpu.dot_dimension_numbers<[1], [0], [0], [1], [0, 0, 1, 1], [], []>} : vector<16x32xf32>, vector<32x64xf32>, vector<16x64xf32> -> vector<16x64xf32>
    %c0_67 = arith.constant 0 : index
    %c0_68 = arith.constant 0 : index
    %186 = vector.load %arg15[%c0_67, %c0_68] : memref<1x64xf32, #tpu.memory_space<vmem>>, vector<1x64xf32>
    %187 = vector.broadcast %186 : vector<1x64xf32> to vector<16x64xf32>
    %188 = arith.addf %185, %187 : vector<16x64xf32>
    %cst_69 = arith.constant 0.000000e+00 : f32
    %189 = vector.broadcast %cst_69 : f32 to vector<16x64xf32>
    %190 = arith.maximumf %188, %189 : vector<16x64xf32>
    %c0_70 = arith.constant 0 : index
    %c0_71 = arith.constant 0 : index
    %191 = vector.load %arg16[%c0_70, %c0_71] : memref<64x32xf32, #tpu.memory_space<vmem>>, vector<64x32xf32>
    %cst_72 = arith.constant dense<0.000000e+00> : vector<16x32xf32>
    %192 = tpu.matmul %190, %191, %cst_72 {dimension_numbers = #tpu.dot_dimension_numbers<[1], [0], [0], [1], [0, 0, 1, 1], [], []>} : vector<16x64xf32>, vector<64x32xf32>, vector<16x32xf32> -> vector<16x32xf32>
    %193 = arith.addf %160, %192 : vector<16x32xf32>
    %c0_73 = arith.constant 0 : index
    %c0_74 = arith.constant 0 : index
    %194 = vector.load %arg17[%c0_73, %c0_74] : memref<1x32xf32, #tpu.memory_space<vmem>>, vector<1x32xf32>
    %195 = vector.broadcast %194 : vector<1x32xf32> to vector<16x32xf32>
    %196 = arith.addf %193, %195 : vector<16x32xf32>
    %c0_75 = arith.constant 0 : index
    %c0_76 = arith.constant 0 : index
    %197 = vector.load %arg18[%c0_75, %c0_76] : memref<16x32xf32, #tpu.memory_space<vmem>>, vector<16x32xf32>
    tpu.vector_store %arg18[%c0_75, %c0_76], %196 {strides = array<i32>} : memref<16x32xf32, #tpu.memory_space<vmem>>, vector<16x32xf32>,
    return
  }
}

</mosaic_0001>

<bundles_post_ra>
// kernel: encoder_block.1
= control target key start
LH: loop header
LB: loop body
LE: loop exit
PB: predicated region body
PF: predicated region fallthrough
CT: control target
= control target key end

     0   :  { %s2068_s0 = inlined_call_operand.hbm [shape: f32[16,32], index: 0, kind: input, shape index: {}]   ;;  %s2069_s1 = inlined_call_operand.hbm [shape: f32[2,1,8], index: 1, kind: input, shape index: {}]   ;;  %s2070_s2 = inlined_call_operand.vmem [shape: f32[1,32], index: 2, kind: input, shape index: {}]   ;;  %s2071_s3 = inlined_call_operand.vmem [shape: f32[1,32], index: 3, kind: input, shape index: {}]   ;;  %s2072_s4 = inlined_call_operand.vmem [shape: f32[32,32], index: 4, kind: input, shape index: {}]   ;;  %s2073_s5 = inlined_call_operand.vmem [shape: f32[1,32], index: 5, kind: input, shape index: {}]   ;;  %s2074_s6 = inlined_call_operand.vmem [shape: f32[32,32], index: 6, kind: input, shape index: {}]   ;;  %s2075_s7 = inlined_call_operand.hbm [shape: f32[1,32], index: 7, kind: input, shape index: {}]   ;;  %s2076_s8 = inlined_call_operand.vmem [shape: f32[32,32], index: 8, kind: input, shape index: {}]   ;;  %s2077_s9 = inlined_call_operand.vmem [shape: f32[1,32], index: 9, kind: input, shape index: {}]   ;;  %s2078_s10 = inlined_call_operand.hbm [shape: f32[32,32], index: 10, kind: input, shape index: {}]   ;;  %s2079_s11 = inlined_call_operand.vmem [shape: f32[1,32], index: 11, kind: input, shape index: {}]   ;;  %s2080_s12 = inlined_call_operand.vmem [shape: f32[1,32], index: 12, kind: input, shape index: {}]   ;;  %s2081_s13 = inlined_call_operand.vmem [shape: f32[1,32], index: 13, kind: input, shape index: {}]   ;;  %s2082_s14 = inlined_call_operand.hbm [shape: f32[32,64], index: 14, kind: input, shape index: {}]   ;;  %s2083_s15 = inlined_call_operand.hbm [shape: f32[1,64], index: 15, kind: input, shape index: {}]   ;;  %s2084_s16 = inlined_call_operand.vmem [shape: f32[64,32], index: 16, kind: input, shape index: {}]   ;;  %s2085_s17 = inlined_call_operand.hbm [shape: f32[1,32], index: 17, kind: input, shape index: {}]   ;;  %s2086_s18 = inlined_call_operand.hbm [shape: f32[16,32], index: 18, kind: output, shape index: {}]  }
   0x1   :  { %2087 = sst [smem:[#allocation20_spill]] %s2068_s0 }
   0x2   :  { %2088 = sst [smem:[#allocation21_spill]] %s2069_s1 }
   0x3   :  { %2089 = sst [smem:[#allocation22_spill]] %s2070_s2 }
   0x4   :  { %23 = vsyncpa [#allocation3], 0 }
   0x5   :  { %24 = vsyncpa [#allocation6], 0 }
   0x6   :  { %25 = vsyncpa [#allocation9], 0 }
   0x7   :  { %26 = vsyncpa [#allocation12], 0  ;;  %s2090_s29 = sld [smem:[#allocation21_spill]] }
   0xd   :  { %s45_s30 = sshll.u32 %s2090_s29, 4  ;;  %s46_s30 = int_to_ptr.hbm [resolvable:$true] %s45_s30 }
   0xe   :  { %27 = vsyncpa [#allocation4], 0  ;;  %s1648_s0 = smov [#allocation5]   ;;  %s1649_s1 = smov 16  }
   0xf   :  { %s47_s19 = sshll.u32 %s1648_s0, 4  ;;  %s1650_s20 = smov 1   ;;  %s48_s19 = int_to_ptr.vmem [resolvable:$true] %s47_s19 }
  0x10   :  { %53 = dma.hbm_to_vmem [thread:$0]  %s46_s30, 32, %s48_s19, [#allocation6], %s1649_s1, %s1649_s1, %s1650_s20  }
  0x11   :  { %s83_s2 = sshll.u32 %s2078_s10, 4  ;;  %s1651_s23 = smov [#allocation8]   ;;  %s84_s2 = int_to_ptr.hbm [resolvable:$true] %s83_s2 }
  0x12   :  { %s85_s24 = sshll.u32 %s1651_s23, 4  ;;  %s116_s27 = sshll.u32 %s2083_s15, 4  ;;  %s86_s24 = int_to_ptr.vmem [resolvable:$true] %s85_s24  ;;  %s117_s27 = int_to_ptr.hbm [resolvable:$true] %s116_s27 }
  0x13   :  { %s1652_s28 = smov 128   ;;  %s1653_s29 = smov 8  }
  0x14   :  { %91 = dma.hbm_to_vmem [thread:$0]  %s84_s2, 512, %s86_s24, [#allocation9], %s1652_s28, %s1652_s28, %s1653_s29  }
  0x15   :  { %s2091_s19 = sld [smem:[#allocation20_spill]]  ;;  %s1654_s10 = smov [#allocation11]  }
  0x16   :  { %s118_s20 = sshll.u32 %s1654_s10, 4  ;;  %s1655_s21 = smov [#allocation2]   ;;  %s119_s20 = int_to_ptr.vmem [resolvable:$true] %s118_s20 }
  0x17   :  { %121 = dma.hbm_to_vmem [thread:$0]  %s117_s27, 16, %s119_s20, [#allocation12]  }
  0x18   :  { %s34_s22 = sshll.u32 %s1655_s21, 4  ;;  %s69_s25 = sshll.u32 %s2075_s7, 4  ;;  %s35_s22 = int_to_ptr.vmem [resolvable:$true] %s34_s22  ;;  %s70_s25 = int_to_ptr.hbm [resolvable:$true] %s69_s25 }
  0x19   :  { %s102_s26 = sshll.u32 %s2082_s14, 4  ;;  %s1656_s30 = smov [#allocation7]   ;;  %s103_s26 = int_to_ptr.hbm [resolvable:$true] %s102_s26 }
  0x1a   :  { %s71_s0 = sshll.u32 %s1656_s30, 4  ;;  %s1657_s27 = smov [#allocation10]   ;;  %s72_s0 = int_to_ptr.vmem [resolvable:$true] %s71_s0 }
  0x1b   :  { %s32_s1 = sshll.u32 %s2091_s19, 4  ;;  %s104_s19 = sshll.u32 %s1657_s27, 4  ;;  %s33_s1 = int_to_ptr.hbm [resolvable:$true] %s32_s1  ;;  %s105_s19 = int_to_ptr.vmem [resolvable:$true] %s104_s19 }
  0x1c   :  { %40 = dma.hbm_to_vmem [thread:$0]  %s33_s1, 256, %s35_s22, [#allocation3], %s1652_s28, %s1652_s28, %s1653_s29  }
  0x1d   :  { %74 = dma.hbm_to_vmem [thread:$0]  %s70_s25, 16, %s72_s0, [#allocation6]  }
  0x1e   :  { %s129_s7 = sshll.u32 %s2085_s17, 4  ;;  %s1658_s1 = smov [#allocation13]   ;;  %s130_s7 = int_to_ptr.hbm [resolvable:$true] %s129_s7 }
  0x1f   :  { %110 = dma.hbm_to_vmem [thread:$0]  %s103_s26, 512, %s105_s19, [#allocation9], %s1652_s28, %s1652_s28, %s1653_s29  }
  0x20   :  { %s131_s21 = sshll.u32 %s1658_s1, 4  ;;  %s132_s21 = int_to_ptr.vmem [resolvable:$true] %s131_s21 }
  0x21   :  { %134 = dma.hbm_to_vmem [thread:$0]  %s130_s7, 16, %s132_s21, [#allocation12]  }
  0x22   :  { %1638 = dma.done.wait [#allocation3], 256  }
  0x23   :  { %1639 = vsyncadd [#allocation3], 4294967040 }
  0x24   :  { %1640 = dma.done.wait [#allocation6], 48  }
  0x25   :  { %1641 = vsyncadd [#allocation6], 4294967248 }
  0x26   :  { %1642 = dma.done.wait [#allocation9], 1024  }
  0x27   :  { %1643 = vsyncadd [#allocation9], 4294966272 }
  0x28   :  { %1644 = dma.done.wait [#allocation12], 32  }
  0x29   :  { %1645 = vsyncadd [#allocation12], 4294967264  ;;  %vm167_vm0 = vcmask 261120   ;;  %v1790_v0 = vld [vmem:[#allocation2] sm:$0xff]  ;;  %v1792_v1 = vld [vmem:[#allocation2 + $0x8] sm:$0xff]  ;;  %v1659_v4 = vmov 32.0  }
  0x2a   :  { %v168_v2 = vsel %vm167_vm0, %v1790_v0, 0.0  ;;  %v171_v3 = vsel %vm167_vm0, %v1792_v1, 0.0  ;;  %1396 = vrcp.f32 %v1659_v4  ;;  %v264_v21 = vld [vmem:[%s2072_s4 + $0x18] sm:$0xff]  ;;  %v263_v24 = vld [vmem:[%s2072_s4 + $0x10] sm:$0xff]  ;;  %v262_v27 = vld [vmem:[%s2072_s4 + $0x8] sm:$0xff]  ;;  %vm386_vm14 = vcmask 64512  }
  0x2b   :  { %169 = vadd.xlane.f32.xlu0 %v168_v2  ;;  %172 = vadd.xlane.f32.xlu1 %v171_v3  ;;  %v303_v22 = vld [vmem:[%s2074_s6 + $0x18] sm:$0xff]  ;;  %v302_v25 = vld [vmem:[%s2074_s6 + $0x10] sm:$0xff]  ;;  %v301_v28 = vld [vmem:[%s2074_s6 + $0x8] sm:$0xff]  ;;  %s1660_s30 = smov 112   ;;  %s1661_s0 = smov 120  }
  0x2c   :  { %v334_v23 = vld [vmem:[%s2076_s8 + $0x18] sm:$0xff]  ;;  %287 = vmatpush.msra.mxu0 %v264_v21  ;;  %320 = vmatpush.msra.mxu1 %v303_v22  ;;  %v333_v26 = vld [vmem:[%s2076_s8 + $0x10] sm:$0xff]  ;;  %v332_v29 = vld [vmem:[%s2076_s8 + $0x8] sm:$0xff]  ;;  %s1311_s19 = sshll.u32 %s2086_s18, 4  ;;  %s1312_s19 = int_to_ptr.hbm [resolvable:$true] %s1311_s19 }
  0x2d   :  { %351 = vmatpush.msra.mxu2 %v334_v23  ;;  %v261_v30 = vld [vmem:[%s2072_s4] sm:$0xff] }
  0x2e   :  { %288 = vmatpush.msra.mxu0 %v263_v24  ;;  %321 = vmatpush.msra.mxu1 %v302_v25  ;;  %v300_v31 = vld [vmem:[%s2074_s6] sm:$0xff] }
  0x2f   :  { %352 = vmatpush.msra.mxu2 %v333_v26  ;;  %v331_v32 = vld [vmem:[%s2076_s8] sm:$0xff]  ;;  %s2092_s8 = sld [smem:[#allocation22_spill]] }
  0x30   :  { %v1397_v5 = vpop.eup %1396  ;;  %289 = vmatpush.msra.mxu0 %v262_v27  ;;  %322 = vmatpush.msra.mxu1 %v301_v28  ;;  %v1388_v27 = vld [vmem:[%s2073_s5] ss:$0 sm:$0xff]  ;;  %v1389_v28 = vld [vmem:[#allocation7] ss:$0 sm:$0xff]  ;;  %s1662_s5 = smov 104  }
  0x31   :  { %v175_v6 = vmul.f32 32.0, %v1397_v5  ;;  %vm179_vm1 = vweird.f32 %v1397_v5  ;;  %353 = vmatpush.msra.mxu2 %v332_v29 }
  0x32   :  { %290 = vmatpush.msra.mxu0 %v261_v30  ;;  %323 = vmatpush.msra.mxu1 %v300_v31 }
  0x33   :  { %v176_v7 = vsub.f32 1.0, %v175_v6  ;;  %354 = vmatpush.msra.mxu2 %v331_v32 }
  0x35   :  { %v177_v8 = vmul.f32 %v1397_v5, %v176_v7  ;;  %v1386_v4 = vld [vmem:[%s2092_s8] ss:$0 sm:$0xff] }
  0x37   :  { %v178_v9 = vadd.f32 %v1397_v5, %v177_v8 }
  0x39   :  { %v1798_v10 = vsel %vm179_vm1, %v1397_v5, %v178_v9  ;;  %v1387_v9 = vld [vmem:[%s2071_s3] ss:$0 sm:$0xff] }
  0x9e   :  { %v170_v11 = vpop.xlane.xlu0 %169  ;;  %v173_v12 = vpop.xlane.xlu1 %172 }
  0x9f   :  { %v181_v13 = vmul.f32 %v1798_v10, %v170_v11  ;;  %v182_v14 = vmul.f32 %v1798_v10, %v173_v12 }
  0xa1   :  { %v1803_v15 = vsub.f32 %v1790_v0, %v181_v13  ;;  %v1806_v16 = vsub.f32 %v1792_v1, %v182_v14 }
  0xa3   :  { %v185_v17 = vmul.f32 %v1803_v15, %v1803_v15  ;;  %v186_v18 = vmul.f32 %v1806_v16, %v1806_v16 }
  0xa5   :  { %v187_v19 = vsel %vm167_vm0, %v185_v17, 0.0  ;;  %v190_v20 = vsel %vm167_vm0, %v186_v18, 0.0 }
  0xa6   :  { %188 = vadd.xlane.f32.xlu0 %v187_v19  ;;  %191 = vadd.xlane.f32.xlu1 %v190_v20 }
 0x119   :  { %v189_v33 = vpop.xlane.xlu0 %188  ;;  %v192_v41 = vpop.xlane.xlu1 %191 }
 0x11a   :  { %v193_v34 = vmul.f32 0.032258064, %v189_v33  ;;  %v194_v42 = vmul.f32 0.032258064, %v192_v41 }
 0x11c   :  { %1398 = vrsqrt.f32 %v193_v34  ;;  %vm202_vm2 = vcmp.eq.f32.partialorder %v193_v34, inf  ;;  %v205_v44 = vand.u32 2147483648, %v193_v34  ;;  %vm204_vm3 = vcmp.eq.f32.partialorder %v193_v34, 0.0 }
 0x11d   :  { %1400 = vrsqrt.f32 %v194_v42  ;;  %vm214_vm4 = vcmp.eq.f32.partialorder %v194_v42, inf  ;;  %v217_v60 = vand.u32 2147483648, %v194_v42  ;;  %vm216_vm6 = vcmp.eq.f32.partialorder %v194_v42, 0.0 }
 0x122   :  { %v1399_v35 = vpop.eup %1398 }
 0x123   :  { %v196_v36 = vmul.f32 %v1399_v35, %v193_v34  ;;  %v1401_v48 = vpop.eup %1400 }
 0x124   :  { %v208_v49 = vmul.f32 %v1401_v48, %v194_v42 }
 0x125   :  { %v197_v37 = vmul.f32 %v1399_v35, %v196_v36 }
 0x126   :  { %v209_v50 = vmul.f32 %v1401_v48, %v208_v49  ;;  %v483_v49 = vld [vmem:[#allocation5] sm:$0x1] }
 0x127   :  { %v198_v38 = vmul.f32 0.5, %v197_v37  ;;  %vm484_vm15 = vcmp.eq.f32.partialorder %v483_v49, 0.0 }
 0x128   :  { %v210_v52 = vmul.f32 0.5, %v209_v50 }
 0x129   :  { %v199_v39 = vsub.f32 1.5, %v198_v38 }
 0x12a   :  { %v211_v54 = vsub.f32 1.5, %v210_v52 }
 0x12b   :  { %v200_v40 = vmul.f32 %v1399_v35, %v199_v39 }
 0x12c   :  { %v212_v57 = vmul.f32 %v1401_v48, %v211_v54 }
 0x12d   :  { %v201_v43 = vmul.f32 %v200_v40, %v193_v34 }
 0x12e   :  { %v213_v61 = vmul.f32 %v212_v57, %v194_v42 }
 0x12f   :  { %v203_v45 = vsel %vm202_vm2, %v193_v34, %v201_v43 }
 0x130   :  { %v206_v46 = vsel %vm204_vm3, %v205_v44, %v203_v45  ;;  %v215_v2 = vsel %vm214_vm4, %v194_v42, %v213_v61 }
 0x131   :  { %v219_v47 = vadd.f32 1e-06, %v206_v46  ;;  %v218_v5 = vsel %vm216_vm6, %v217_v60, %v215_v2 }
 0x132   :  { %v220_v7 = vadd.f32 1e-06, %v218_v5 }
 0x133   :  { %1402 = vrcp.f32 %v219_v47  ;;  %v232_v56 = vand.u32 2147483648, %v219_v47  ;;  %v230_v59 = vand.u32 2147483647, %v219_v47  ;;  %vm226_vm7 = vweird.f32 %v219_v47 }
 0x134   :  { %1404 = vrcp.f32 %v220_v7  ;;  %v246_v17 = vand.u32 2147483648, %v220_v7  ;;  %vm240_vm10 = vweird.f32 %v220_v7 }
 0x135   :  { %v233_v63 = vor.u32 1.1754944e-38, %v232_v56  ;;  %vm231_vm9 = vcmp.eq.f32.partialorder %v230_v59, 8.507059e+37 }
 0x136   :  { %v247_v20 = vor.u32 1.1754944e-38, %v246_v17 }
 0x139   :  { %v1403_v51 = vpop.eup %1402 }
 0x13a   :  { %v222_v53 = vmul.f32 %v1403_v51, %v219_v47  ;;  %vm227_vm5 = vweird.f32 %v1403_v51  ;;  %v1405_v13 = vpop.eup %1404 }
 0x13b   :  { %vm228_vm8 = vmor %vm226_vm7, %vm227_vm5  ;;  %v236_v14 = vmul.f32 %v1405_v13, %v220_v7  ;;  %vm241_vm11 = vweird.f32 %v1405_v13 }
 0x13c   :  { %v223_v55 = vsub.f32 1.0, %v222_v53  ;;  %vm242_vm12 = vmor %vm240_vm10, %vm241_vm11 }
 0x13d   :  { %v237_v18 = vsub.f32 1.0, %v236_v14 }
 0x13e   :  { %v224_v58 = vmul.f32 %v1403_v51, %v223_v55 }
 0x13f   :  { %v238_v19 = vmul.f32 %v1405_v13, %v237_v18 }
 0x140   :  { %v225_v62 = vadd.f32 %v1403_v51, %v224_v58 }
 0x141   :  { %v239_v21 = vadd.f32 %v1405_v13, %v238_v19  ;;  %v801_v19 = vld [vmem:[#allocation5 + $0x1] sm:$0x1] }
 0x142   :  { %v229_v3 = vsel %vm228_vm8, %v1403_v51, %v225_v62  ;;  %v1663_v51 = vmov 0   ;;  %vm802_vm2 = vcmp.eq.f32.partialorder %v801_v19, 0.0 }
 0x143   :  { %v234_v6 = vsel %vm231_vm9, %v233_v63, %v229_v3  ;;  %v243_v22 = vsel %vm242_vm12, %v1405_v13, %v239_v21  ;;  %v485_v52 = vsel %vm484_vm15, 1, %v1663_v51 }
 0x144   :  { %v249_v8 = vmul.f32 %v234_v6, %v1803_v15  ;;  %v244_v15 = vand.u32 2147483647, %v220_v7  ;;  %v486_v53 = vperm.slane %v485_v52, 0 }
 0x146   :  { %v254_v11 = vmul.f32 %v1386_v4, %v249_v8  ;;  %vm245_vm13 = vcmp.eq.f32.partialorder %v244_v15, 8.507059e+37  ;;  %vm487_vm1 = vcmp.eq.s32.totalorder %v486_v53, 1 }
 0x147   :  { %v248_v23 = vsel %vm245_vm13, %v247_v20, %v243_v22 }
 0x148   :  { %v259_v12 = vadd.f32 %v1387_v9, %v254_v11  ;;  %v250_v24 = vmul.f32 %v248_v23, %v1806_v16  ;;  %v1390_v16 = vld [vmem:[%s2077_s9] ss:$0 sm:$0xff]  ;;  %v803_v23 = vsel %vm802_vm2, 1, %v1663_v51 }
 0x14a   :  { %1327 = vmatmul.msk.f32.vlgmr.msra.gmra.mxu0 %vm167_vm0, %v259_v12  ;;  %1329 = vmatmul.msk.f32.vlgmr.msra.gmra.mxu1 %vm167_vm0, %v259_v12  ;;  %v255_v25 = vmul.f32 %v1386_v4, %v250_v24 }
 0x14b   :  { %1331 = vmatmul.msk.f32.vlgmr.msra.gmra.mxu2 %vm167_vm0, %v259_v12 }
 0x14c   :  { %v260_v26 = vadd.f32 %v1387_v9, %v255_v25 }
 0x152   :  { %1330 = vmatmul.msk.f32.gmra.mxu1 %vm167_vm0, %v260_v26  ;;  %1328 = vmatmul.msk.f32.gmra.mxu0 %vm167_vm0, %v260_v26 }
 0x153   :  { %1332 = vmatmul.msk.f32.gmra.mxu2 %vm167_vm0, %v260_v26 }
 0x1c7   :  { %v292_v29 = vpop.f32.mrf.mxu0  ;;  %v325_v30 = vpop.f32.mrf.mxu1 }
 0x1c8   :  { %v293_v31 = vadd.f32 %v1388_v27, %v292_v29  ;;  %v326_v32 = vadd.f32 %v1389_v28, %v325_v30 }
 0x1ca   :  { %v298_v33 = vmul.f32 0.35355338, %v293_v31  ;;  %372 = vrot.lane.b32.xlu0 %v326_v32, %s1660_s30  ;;  %370 = vrot.lane.b32.xlu2 %v326_v32, %s1661_s0 }
 0x1cb   :  { %1333 = vmatpush.xpose.msk.msra.mxu3 %vm386_vm14, %v326_v32 }
 0x1cc   :  { %365 = vrot.lane.b32.xlu1 %v298_v33, %s1660_s30 }
 0x1ce   :  { %v356_v34 = vpop.f32.mrf.mxu2  ;;  %1334 = vmatmul.msk.f32.vlgmr.msra.gmra.mxu3 %vm386_vm14, %v298_v33 }
 0x1cf   :  { %v1875_v35 = vadd.f32 %v1390_v16, %v356_v34  ;;  %v328_v36 = vpop.f32.mrf.mxu1  ;;  %v295_v37 = vpop.f32.mrf.mxu0 }
 0x1d0   :  { %v329_v38 = vadd.f32 %v1389_v28, %v328_v36  ;;  %v296_v39 = vadd.f32 %v1388_v27, %v295_v37  ;;  %v804_v27 = vperm.slane %v803_v23, 0 }
 0x1d2   :  { %380 = vrot.lane.b32.xlu0 %v1875_v35, %s1660_s30  ;;  %363 = vrot.lane.b32.xlu2 %v298_v33, %s1661_s0  ;;  %v1881_v40 = vmul.f32 0.35355338, %v296_v39  ;;  %vm1917_vm3 = vcmp.eq.s32.totalorder %v804_v27, 1 }
 0x1d3   :  { %1345 = vmatpush.xpose.msk.msrb.mxu1 %vm386_vm14, %v329_v38 }
 0x1d6   :  { %1346 = vmatmul.msk.f32.vlgmr.msrb.gmra.mxu1 %vm386_vm14, %v1881_v40  ;;  %v359_v41 = vpop.f32.mrf.mxu2 }
 0x1d7   :  { %v1886_v42 = vadd.f32 %v1390_v16, %v359_v41 }
 0x1d9   :  { %924 = vmatpush.msra.mxu1 %v1886_v42 }
 0x1da   :  { %374 = vrot.lane.b32.xlu2 %v326_v32, %s1662_s5 }
 0x1e2   :  { %367 = vrot.lane.b32.xlu2 %v298_v33, %s1662_s5 }
 0x224   :  { %v371_v43 = vpop.permute.xlu2 %370 }
 0x225   :  { %1335 = vmatpush.xpose.msk.msrb.mxu3 %vm386_vm14, %v371_v43 }
 0x22c   :  { %v364_v44 = vpop.permute.xlu2 %363 }
 0x22d   :  { %1336 = vmatmul.msk.f32.vlgmr.msrb.gmra.mxu3 %vm386_vm14, %v364_v44 }
 0x234   :  { %v375_v45 = vpop.permute.xlu2 %374 }
 0x235   :  { %1339 = vmatpush.xpose.msk.msrb.mxu0 %vm386_vm14, %v375_v45 }
 0x23c   :  { %v373_v46 = vpop.permute.xlu0 %372  ;;  %v368_v47 = vpop.permute.xlu2 %367 }
 0x23d   :  { %1337 = vmatpush.xpose.msk.msra.mxu3 %vm386_vm14, %v373_v46  ;;  %1340 = vmatmul.msk.f32.vlgmr.msrb.gmra.mxu0 %vm386_vm14, %v368_v47 }
 0x23e   :  { %v366_v48 = vpop.permute.xlu1 %365 }
 0x240   :  { %1338 = vmatmul.msk.f32.vlgmr.msra.gmra.mxu3 %vm386_vm14, %v366_v48 }
 0x241   :  { %606 = vmatpush.msrb.mxu3 %v1875_v35 }
 0x244   :  { %v381_v50 = vpop.permute.xlu0 %380 }
 0x245   :  { %652 = vmatpush.msra.mxu3 %v381_v50 }
 0x251   :  { %v408_v54 = vpop.f32.mrf.mxu3 }
 0x252   :  { %v488_v55 = vsel %vm487_vm1, -1e+09, %v408_v54 }
 0x253   :  { %v492_v56 = vsel %vm386_vm14, %v488_v55, -inf  ;;  %v725_v28 = vpop.f32.mrf.mxu1 }
 0x254   :  { %493 = vmax.xlane.f32.xlu2 %v492_v56  ;;  %v1927_v32 = vsel %vm1917_vm3, -1e+09, %v725_v28 }
 0x255   :  { %v810_v33 = vsel %vm386_vm14, %v1927_v32, -inf }
 0x2b0   :  { %v432_v57 = vpop.f32.mrf.mxu3 }
 0x2b1   :  { %v489_v58 = vsel %vm487_vm1, -1e+09, %v432_v57 }
 0x2b2   :  { %v495_v59 = vsel %vm386_vm14, %v489_v58, -inf }
 0x2b3   :  { %496 = vmax.xlane.f32.xlu1 %v495_v59 }
 0x2ba   :  { %v480_v60 = vpop.f32.mrf.mxu0 }
 0x2bb   :  { %v491_v61 = vsel %vm487_vm1, -1e+09, %v480_v60 }
 0x2bc   :  { %v501_v62 = vsel %vm386_vm14, %v491_v61, -inf }
 0x2bd   :  { %502 = vmax.xlane.f32.xlu2 %v501_v62 }
 0x2c3   :  { %v456_v63 = vpop.f32.mrf.mxu3 }
 0x2c4   :  { %v490_v2 = vsel %vm487_vm1, -1e+09, %v456_v63 }
 0x2c5   :  { %v498_v3 = vsel %vm386_vm14, %v490_v2, -inf }
 0x2c6   :  { %499 = vmax.xlane.f32.xlu0 %v498_v3 }
 0x2c7   :  { %v494_v4 = vpop.xlane.xlu2 %493 }
 0x2c8   :  { %v504_v5 = vsub.f32 %v488_v55, %v494_v4 }
 0x2ca   :  { %v508_v6 = vmul.f32 1.442695, %v504_v5 }
 0x2cc   :  { %377 = vrot.lane.b32.xlu1 %v1875_v35, %s1661_s0  ;;  %1406 = vpow2.f32 %v508_v6 }
 0x2d2   :  { %v1407_v7 = vpop.eup %1406 }
 0x2d3   :  { %v516_v8 = vsel %vm386_vm14, %v1407_v7, 0.0 }
 0x2d5   :  { %690 = vrot.lane.b32.xlu2 %v329_v38, %s1660_s30 }
 0x2da   :  { %683 = vrot.lane.b32.xlu0 %v1881_v40, %s1660_s30 }
 0x304   :  { %517 = vadd.xlane.f32.xlu0 %v516_v8 }
 0x318   :  { %688 = vrot.lane.b32.xlu0 %v329_v38, %s1661_s0 }
 0x320   :  { %692 = vrot.lane.b32.xlu0 %v329_v38, %s1662_s5 }
 0x326   :  { %v497_v9 = vpop.xlane.xlu1 %496 }
 0x327   :  { %v505_v11 = vsub.f32 %v489_v58, %v497_v9 }
 0x329   :  { %v510_v12 = vmul.f32 1.442695, %v505_v11 }
 0x32b   :  { %1408 = vpow2.f32 %v510_v12 }
 0x330   :  { %v503_v13 = vpop.xlane.xlu2 %502 }
 0x331   :  { %v1909_v14 = vpop.eup %1408  ;;  %v507_v17 = vsub.f32 %v491_v61, %v503_v13 }
 0x332   :  { %v519_v18 = vsel %vm386_vm14, %v1909_v14, 0.0 }
 0x333   :  { %v514_v15 = vmul.f32 1.442695, %v507_v17  ;;  %520 = vadd.xlane.f32.xlu1 %v519_v18 }
 0x335   :  { %1410 = vpow2.f32 %v514_v15 }
 0x338   :  { %v691_v48 = vpop.permute.xlu2 %690 }
 0x339   :  { %v500_v20 = vpop.xlane.xlu0 %499 }
 0x33a   :  { %v506_v21 = vsub.f32 %v490_v2, %v500_v20 }
 0x33b   :  { %v1913_v22 = vpop.eup %1410 }
 0x33c   :  { %v512_v24 = vmul.f32 1.442695, %v506_v21  ;;  %v525_v25 = vsel %vm386_vm14, %v1913_v22, 0.0 }
 0x33d   :  { %526 = vadd.xlane.f32.xlu2 %v525_v25 }
 0x33e   :  { %1412 = vpow2.f32 %v512_v24  ;;  %v378_v26 = vpop.permute.xlu1 %377 }
 0x33f   :  { %629 = vmatpush.msrb.mxu2 %v378_v26 }
 0x344   :  { %v1921_v30 = vpop.eup %1412 }
 0x345   :  { %v522_v31 = vsel %vm386_vm14, %v1921_v30, 0.0 }
 0x346   :  { %523 = vadd.xlane.f32.xlu2 %v522_v31 }
 0x34a   :  { %811 = vmax.xlane.f32.xlu0 %v810_v33 }
 0x34c   :  { %681 = vrot.lane.b32.xlu1 %v1881_v40, %s1661_s0  ;;  %v1937_v16 = vpop.permute.xlu0 %683 }
 0x354   :  { %685 = vrot.lane.b32.xlu1 %v1881_v40, %s1662_s5 }
 0x35e   :  { %383 = vrot.lane.b32.xlu2 %v1875_v35, %s1662_s5 }
 0x377   :  { %v518_v34 = vpop.xlane.xlu0 %517 }
 0x378   :  { %1414 = vrcp.f32 %v518_v34  ;;  %v539_v39 = vand.u32 2147483648, %v518_v34  ;;  %v537_v43 = vand.u32 2147483647, %v518_v34  ;;  %vm533_vm5 = vweird.f32 %v518_v34 }
 0x37a   :  { %v540_v45 = vor.u32 1.1754944e-38, %v539_v39  ;;  %vm538_vm7 = vcmp.eq.f32.partialorder %v537_v43, 8.507059e+37 }
 0x37e   :  { %v1415_v36 = vpop.eup %1414 }
 0x37f   :  { %v529_v37 = vmul.f32 %v1415_v36, %v518_v34  ;;  %vm534_vm4 = vweird.f32 %v1415_v36 }
 0x380   :  { %vm535_vm6 = vmor %vm533_vm5, %vm534_vm4 }
 0x381   :  { %v530_v38 = vsub.f32 1.0, %v529_v37 }
 0x383   :  { %v531_v41 = vmul.f32 %v1415_v36, %v530_v38 }
 0x385   :  { %v532_v44 = vadd.f32 %v1415_v36, %v531_v41 }
 0x387   :  { %v536_v46 = vsel %vm535_vm6, %v1415_v36, %v532_v44 }
 0x388   :  { %v541_v40 = vsel %vm538_vm7, %v540_v45, %v536_v46 }
 0x389   :  { %v542_v47 = vmul.f32 %v1407_v7, %v541_v40 }
 0x38a   :  { %v689_v35 = vpop.permute.xlu0 %688 }
 0x38b   :  { %1341 = vmatmul.msk.f32.vlgmr.msrb.gmra.mxu3 %vm386_vm14, %v542_v47  ;;  %1347 = vmatpush.xpose.msk.msra.mxu2 %vm386_vm14, %v689_v35 }
 0x38c   :  { %1349 = vmatpush.xpose.msk.msrb.mxu3 %vm386_vm14, %v691_v48 }
 0x392   :  { %v693_v18 = vpop.permute.xlu0 %692 }
 0x3a6   :  { %v521_v49 = vpop.xlane.xlu1 %520 }
 0x3a7   :  { %1416 = vrcp.f32 %v521_v49  ;;  %v554_v54 = vand.u32 2147483648, %v521_v49  ;;  %v552_v56 = vand.u32 2147483647, %v521_v49  ;;  %vm548_vm9 = vweird.f32 %v521_v49 }
 0x3a9   :  { %v555_v58 = vor.u32 1.1754944e-38, %v554_v54  ;;  %vm553_vm11 = vcmp.eq.f32.partialorder %v552_v56, 8.507059e+37 }
 0x3ad   :  { %v1417_v50 = vpop.eup %1416 }
 0x3ae   :  { %v544_v51 = vmul.f32 %v1417_v50, %v521_v49  ;;  %vm549_vm8 = vweird.f32 %v1417_v50 }
 0x3af   :  { %vm550_vm10 = vmor %vm548_vm9, %vm549_vm8 }
 0x3b0   :  { %v545_v52 = vsub.f32 1.0, %v544_v51  ;;  %v527_v53 = vpop.xlane.xlu2 %526 }
 0x3b1   :  { %1418 = vrcp.f32 %v527_v53  ;;  %v584_v4 = vand.u32 2147483648, %v527_v53  ;;  %v582_v6 = vand.u32 2147483647, %v527_v53  ;;  %vm578_vm13 = vweird.f32 %v527_v53 }
 0x3b2   :  { %v546_v55 = vmul.f32 %v1417_v50, %v545_v52 }
 0x3b3   :  { %v585_v8 = vor.u32 1.1754944e-38, %v584_v4  ;;  %vm583_vm1 = vcmp.eq.f32.partialorder %v582_v6, 8.507059e+37 }
 0x3b4   :  { %v547_v57 = vadd.f32 %v1417_v50, %v546_v55 }
 0x3b6   :  { %v551_v59 = vsel %vm550_vm10, %v1417_v50, %v547_v57  ;;  %v999_v50 = vld [vmem:[#allocation8 + $0x8] sm:$0xff] }
 0x3b7   :  { %v1419_v60 = vpop.eup %1418  ;;  %v556_v61 = vsel %vm553_vm11, %v555_v58, %v551_v59  ;;  %1021 = vmatpush.msrb.mxu1 %v999_v50 }
 0x3b8   :  { %v574_v62 = vmul.f32 %v1419_v60, %v527_v53  ;;  %v557_v63 = vmul.f32 %v1909_v14, %v556_v61  ;;  %vm579_vm12 = vweird.f32 %v1419_v60 }
 0x3b9   :  { %v524_v2 = vpop.xlane.xlu2 %523  ;;  %vm580_vm15 = vmor %vm578_vm13, %vm579_vm12 }
 0x3ba   :  { %v575_v3 = vsub.f32 1.0, %v574_v62  ;;  %1420 = vrcp.f32 %v524_v2  ;;  %1342 = vmatmul.msk.f32.vlgmr.msrb.gmra.mxu2 %vm386_vm14, %v557_v63  ;;  %v569_v20 = vand.u32 2147483648, %v524_v2  ;;  %v567_v23 = vand.u32 2147483647, %v524_v2 }
 0x3bb   :  { %vm563_vm4 = vweird.f32 %v524_v2 }
 0x3bc   :  { %v576_v5 = vmul.f32 %v1419_v60, %v575_v3  ;;  %v570_v25 = vor.u32 1.1754944e-38, %v569_v20  ;;  %vm568_vm6 = vcmp.eq.f32.partialorder %v567_v23, 8.507059e+37 }
 0x3be   :  { %v577_v7 = vadd.f32 %v1419_v60, %v576_v5  ;;  %v682_v17 = vpop.permute.xlu1 %681 }
 0x3c0   :  { %v1421_v9 = vpop.eup %1420  ;;  %v581_v11 = vsel %vm580_vm15, %v1419_v60, %v577_v7 }
 0x3c1   :  { %v586_v12 = vsel %vm583_vm1, %v585_v8, %v581_v11  ;;  %v559_v13 = vmul.f32 %v1421_v9, %v524_v2  ;;  %v384_v14 = vpop.permute.xlu2 %383  ;;  %vm564_vm2 = vweird.f32 %v1421_v9 }
 0x3c2   :  { %675 = vmatpush.msra.mxu0 %v384_v14  ;;  %1348 = vmatmul.msk.f32.vlgmr.msra.gmra.mxu2 %vm386_vm14, %v682_v17  ;;  %v587_v15 = vmul.f32 %v1913_v22, %v586_v12  ;;  %vm565_vm5 = vmor %vm563_vm4, %vm564_vm2  ;;  %v812_v22 = vpop.xlane.xlu0 %811 }
 0x3c3   :  { %v560_v19 = vsub.f32 1.0, %v559_v13  ;;  %v822_v34 = vsub.f32 %v1927_v32, %v812_v22  ;;  %v1058_v22 = vld [vmem:[#allocation8 + $0x10] sm:$0xff] }
 0x3c4   :  { %1351 = vmatpush.xpose.msk.msrb.mxu0 %vm386_vm14, %v693_v18 }
 0x3c5   :  { %1344 = vmatmul.msk.f32.vlgmr.msra.gmra.mxu0 %vm386_vm14, %v587_v15  ;;  %v561_v21 = vmul.f32 %v1421_v9, %v560_v19  ;;  %v826_v36 = vmul.f32 1.442695, %v822_v34  ;;  %v998_v15 = vld [vmem:[#allocation8] sm:$0xff] }
 0x3c6   :  { %v686_v28 = vpop.permute.xlu1 %685 }
 0x3c7   :  { %v562_v24 = vadd.f32 %v1421_v9, %v561_v21  ;;  %1422 = vpow2.f32 %v826_v36 }
 0x3c9   :  { %v566_v26 = vsel %vm565_vm5, %v1421_v9, %v562_v24 }
 0x3ca   :  { %v571_v27 = vsel %vm568_vm6, %v570_v25, %v566_v26 }
 0x3cb   :  { %v572_v31 = vmul.f32 %v1921_v30, %v571_v27 }
 0x3cd   :  { %1352 = vmatmul.msk.f32.vlgmr.msrb.gmra.mxu0 %vm386_vm14, %v686_v28  ;;  %1343 = vmatmul.msk.f32.vlgmr.msra.gmra.mxu3 %vm386_vm14, %v572_v31  ;;  %v1423_v41 = vpop.eup %1422 }
 0x3ce   :  { %v834_v43 = vsel %vm386_vm14, %v1423_v41, 0.0 }
 0x3d5   :  { %1350 = vmatmul.msk.f32.vlgmr.msrb.gmra.mxu3 %vm386_vm14, %v1937_v16 }
 0x40e   :  { %v1957_v30 = vpop.f32.mrf.mxu3 }
 0x43d   :  { %v631_v33 = vpop.f32.mrf.mxu2 }
 0x442   :  { %v1962_v16 = vpop.f32.mrf.mxu0 }
 0x445   :  { %v749_v37 = vpop.f32.mrf.mxu2 }
 0x446   :  { %v807_v38 = vsel %vm1917_vm3, -1e+09, %v749_v37 }
 0x447   :  { %v813_v39 = vsel %vm386_vm14, %v807_v38, -inf }
 0x448   :  { %814 = vmax.xlane.f32.xlu1 %v813_v39 }
 0x44a   :  { %v797_v40 = vpop.f32.mrf.mxu0 }
 0x44b   :  { %v809_v47 = vsel %vm1917_vm3, -1e+09, %v797_v40 }
 0x44c   :  { %v819_v35 = vsel %vm386_vm14, %v809_v47, -inf }
 0x450   :  { %v1960_v44 = vpop.f32.mrf.mxu3  ;;  %835 = vadd.xlane.f32.xlu1 %v834_v43 }
 0x458   :  { %v773_v32 = vpop.f32.mrf.mxu3 }
 0x459   :  { %v808_v45 = vsel %vm1917_vm3, -1e+09, %v773_v32 }
 0x45a   :  { %v816_v46 = vsel %vm386_vm14, %v808_v45, -inf }
 0x45b   :  { %817 = vmax.xlane.f32.xlu2 %v816_v46 }
 0x463   :  { %820 = vmax.xlane.f32.xlu2 %v819_v35 }
 0x469   :  { %698 = vrot.lane.b32.xlu1 %v1886_v42, %s1660_s30 }
 0x4bb   :  { %v815_v48 = vpop.xlane.xlu1 %814 }
 0x4bc   :  { %v823_v49 = vsub.f32 %v807_v38, %v815_v48 }
 0x4be   :  { %v828_v51 = vmul.f32 1.442695, %v823_v49 }
 0x4c0   :  { %1424 = vpow2.f32 %v828_v51 }
 0x4c3   :  { %v836_v52 = vpop.xlane.xlu1 %835 }
 0x4c4   :  { %1426 = vrcp.f32 %v836_v52  ;;  %v857_v57 = vand.u32 2147483648, %v836_v52  ;;  %v855_v60 = vand.u32 2147483647, %v836_v52  ;;  %vm851_vm7 = vweird.f32 %v836_v52 }
 0x4c6   :  { %v1425_v53 = vpop.eup %1424  ;;  %v858_v62 = vor.u32 1.1754944e-38, %v857_v57  ;;  %vm856_vm9 = vcmp.eq.f32.partialorder %v855_v60, 8.507059e+37 }
 0x4c7   :  { %v837_v54 = vsel %vm386_vm14, %v1425_v53, 0.0 }
 0x4c8   :  { %838 = vadd.xlane.f32.xlu2 %v837_v54 }
 0x4ca   :  { %v1427_v29 = vpop.eup %1426 }
 0x4cb   :  { %v847_v55 = vmul.f32 %v1427_v29, %v836_v52  ;;  %vm852_vm3 = vweird.f32 %v1427_v29 }
 0x4cc   :  { %vm853_vm8 = vmor %vm851_vm7, %vm852_vm3 }
 0x4cd   :  { %v848_v56 = vsub.f32 1.0, %v847_v55 }
 0x4ce   :  { %v818_v58 = vpop.xlane.xlu2 %817 }
 0x4cf   :  { %v849_v59 = vmul.f32 %v1427_v29, %v848_v56  ;;  %v824_v6 = vsub.f32 %v808_v45, %v818_v58  ;;  %v1090_v58 = vld [vmem:[#allocation8 + $0x18] sm:$0xff] }
 0x4d1   :  { %v850_v61 = vadd.f32 %v1427_v29, %v849_v59  ;;  %v830_v9 = vmul.f32 1.442695, %v824_v6 }
 0x4d3   :  { %v854_v63 = vsel %vm853_vm8, %v1427_v29, %v850_v61 }
 0x4d4   :  { %v859_v2 = vsel %vm856_vm9, %v858_v62, %v854_v63 }
 0x4d5   :  { %v860_v3 = vmul.f32 %v1423_v41, %v859_v2 }
 0x4d6   :  { %v821_v4 = vpop.xlane.xlu2 %820 }
 0x4d7   :  { %v825_v5 = vsub.f32 %v809_v47, %v821_v4  ;;  %1353 = vmatmul.msk.f32.vlgmr.msra.gmra.mxu1 %vm386_vm14, %v860_v3 }
 0x4d9   :  { %v832_v7 = vmul.f32 1.442695, %v825_v5 }
 0x4db   :  { %1428 = vpow2.f32 %v832_v7  ;;  %v699_v8 = vpop.permute.xlu1 %698 }
 0x4dc   :  { %970 = vmatpush.msra.mxu3 %v699_v8  ;;  %1430 = vpow2.f32 %v830_v9 }
 0x4de   :  { %1080 = vmatpush.msrb.mxu3 %v1058_v22 }
 0x4df   :  { %1357 = vmatmul.msk.f32.vlgmr.msrb.gmra.mxu1 %vm386_vm14, %v631_v33 }
 0x4e0   :  { %695 = vrot.lane.b32.xlu2 %v1886_v42, %s1661_s0 }
 0x4e1   :  { %v1977_v11 = vpop.eup %1428 }
 0x4e2   :  { %v843_v12 = vsel %vm386_vm14, %v1977_v11, 0.0  ;;  %v1981_v13 = vpop.eup %1430 }
 0x4e3   :  { %844 = vadd.xlane.f32.xlu0 %v843_v12  ;;  %v840_v17 = vsel %vm386_vm14, %v1981_v13, 0.0 }
 0x4eb   :  { %841 = vadd.xlane.f32.xlu0 %v840_v17 }
 0x4ff   :  { %701 = vrot.lane.b32.xlu0 %v1886_v42, %s1662_s5 }
 0x53b   :  { %v839_v14 = vpop.xlane.xlu2 %838 }
 0x53c   :  { %1432 = vrcp.f32 %v839_v14  ;;  %v872_v23 = vand.u32 2147483648, %v839_v14  ;;  %v870_v25 = vand.u32 2147483647, %v839_v14  ;;  %vm866_vm11 = vweird.f32 %v839_v14 }
 0x53e   :  { %v873_v27 = vor.u32 1.1754944e-38, %v872_v23  ;;  %vm871_vm13 = vcmp.eq.f32.partialorder %v870_v25, 8.507059e+37 }
 0x542   :  { %v1433_v18 = vpop.eup %1432 }
 0x543   :  { %v862_v19 = vmul.f32 %v1433_v18, %v839_v14  ;;  %v696_v20 = vpop.permute.xlu2 %695  ;;  %vm867_vm10 = vweird.f32 %v1433_v18 }
 0x544   :  { %947 = vmatpush.msrb.mxu2 %v696_v20  ;;  %vm868_vm12 = vmor %vm866_vm11, %vm867_vm10 }
 0x545   :  { %v863_v21 = vsub.f32 1.0, %v862_v19 }
 0x546   :  { %1050 = vmatpush.msra.mxu2 %v998_v15 }
 0x547   :  { %v864_v24 = vmul.f32 %v1433_v18, %v863_v21 }
 0x549   :  { %v865_v26 = vadd.f32 %v1433_v18, %v864_v24 }
 0x54b   :  { %v869_v28 = vsel %vm868_vm12, %v1433_v18, %v865_v26  ;;  %v1221_v26 = vld [vmem:[#allocation10 + $0x18] sm:$0xff] }
 0x54c   :  { %v874_v42 = vsel %vm871_vm13, %v873_v27, %v869_v28  ;;  %v1220_v27 = vld [vmem:[#allocation10 + $0x10] sm:$0xff]  ;;  %1244 = vmatpush.msra.mxu1 %v1221_v26  ;;  %v1219_v28 = vld [vmem:[#allocation10 + $0x8] sm:$0xff] }
 0x54d   :  { %v875_v31 = vmul.f32 %v1425_v53, %v874_v42  ;;  %v1218_v42 = vld [vmem:[#allocation10] sm:$0xff] }
 0x54e   :  { %1245 = vmatpush.msra.mxu1 %v1220_v27 }
 0x54f   :  { %1354 = vmatmul.msk.f32.vlgmr.msrb.gmra.mxu2 %vm386_vm14, %v875_v31 }
 0x550   :  { %1246 = vmatpush.msra.mxu1 %v1219_v28 }
 0x552   :  { %1247 = vmatpush.msra.mxu1 %v1218_v42 }
 0x554   :  { %v926_v36 = vpop.f32.mrf.mxu1 }
 0x556   :  { %v845_v33 = vpop.xlane.xlu0 %844 }
 0x557   :  { %1434 = vrcp.f32 %v845_v33  ;;  %1359 = vmatmul.msk.f32.vlgmr.msra.gmra.mxu2 %vm386_vm14, %v1957_v30  ;;  %v902_v46 = vand.u32 2147483648, %v845_v33  ;;  %vm896_vm1 = vweird.f32 %v845_v33  ;;  %v900_v47 = vand.u32 2147483647, %v845_v33 }
 0x559   :  { %v903_v50 = vor.u32 1.1754944e-38, %v902_v46  ;;  %vm901_vm6 = vcmp.eq.f32.partialorder %v900_v47, 8.507059e+37 }
 0x55c   :  { %v1023_v63 = vpop.f32.mrf.mxu1 }
 0x55d   :  { %v1435_v34 = vpop.eup %1434 }
 0x55e   :  { %v892_v37 = vmul.f32 %v1435_v34, %v845_v33  ;;  %v842_v38 = vpop.xlane.xlu0 %841  ;;  %vm897_vm15 = vweird.f32 %v1435_v34 }
 0x55f   :  { %1436 = vrcp.f32 %v842_v38  ;;  %1360 = vmatmul.msk.f32.gmra.mxu2 %vm386_vm14, %v926_v36  ;;  %v887_v35 = vand.u32 2147483648, %v842_v38  ;;  %vm898_vm2 = vmor %vm896_vm1, %vm897_vm15  ;;  %v885_v48 = vand.u32 2147483647, %v842_v38  ;;  %vm881_vm5 = vweird.f32 %v842_v38 }
 0x560   :  { %v893_v39 = vsub.f32 1.0, %v892_v37 }
 0x561   :  { %v888_v52 = vor.u32 1.1754944e-38, %v887_v35  ;;  %vm886_vm7 = vcmp.eq.f32.partialorder %v885_v48, 8.507059e+37 }
 0x562   :  { %v894_v41 = vmul.f32 %v1435_v34, %v893_v39 }
 0x564   :  { %v895_v45 = vadd.f32 %v1435_v34, %v894_v41 }
 0x565   :  { %v1437_v43 = vpop.eup %1436 }
 0x566   :  { %v877_v32 = vmul.f32 %v1437_v43, %v842_v38  ;;  %vm882_vm4 = vweird.f32 %v1437_v43  ;;  %v899_v49 = vsel %vm898_vm2, %v1435_v34, %v895_v45 }
 0x567   :  { %vm883_vm3 = vmor %vm881_vm5, %vm882_vm4  ;;  %v904_v53 = vsel %vm901_vm6, %v903_v50, %v899_v49  ;;  %vm1265_vm6 = vcmask 523264  }
 0x568   :  { %v878_v40 = vsub.f32 1.0, %v877_v32  ;;  %v905_v57 = vmul.f32 %v1977_v11, %v904_v53 }
 0x56a   :  { %v879_v30 = vmul.f32 %v1437_v43, %v878_v40 }
 0x56c   :  { %v880_v51 = vadd.f32 %v1437_v43, %v879_v30 }
 0x56e   :  { %v884_v54 = vsel %vm883_vm3, %v1437_v43, %v880_v51 }
 0x56f   :  { %v889_v29 = vsel %vm886_vm7, %v888_v52, %v884_v54 }
 0x570   :  { %v890_v55 = vmul.f32 %v1981_v13, %v889_v29 }
 0x571   :  { %v702_v56 = vpop.permute.xlu0 %701 }
 0x572   :  { %1355 = vmatmul.msk.f32.vlgmr.msra.gmra.mxu3 %vm386_vm14, %v890_v55  ;;  %993 = vmatpush.msra.mxu0 %v702_v56  ;;  %v1392_v55 = vld [vmem:[%s2080_s12] ss:$0 sm:$0xff] }
 0x573   :  { %1356 = vmatmul.msk.f32.vlgmr.msra.gmra.mxu0 %vm386_vm14, %v905_v57 }
 0x574   :  { %1112 = vmatpush.msrb.mxu0 %v1090_v58  ;;  %v1393_v58 = vld [vmem:[%s2081_s13] ss:$0 sm:$0xff] }
 0x57a   :  { %1361 = vmatmul.msk.f32.vlgmr.msrb.gmra.mxu3 %vm386_vm14, %v1960_v44  ;;  %v1391_v44 = vld [vmem:[%s2079_s11] ss:$0 sm:$0xff] }
 0x57b   :  { %1363 = vmatmul.msk.f32.vlgmr.msrb.gmra.mxu0 %vm386_vm14, %v1962_v16 }
 0x5d2   :  { %v949_v59 = vpop.f32.mrf.mxu2 }
 0x5d3   :  { %1358 = vmatmul.msk.f32.gmra.mxu1 %vm386_vm14, %v949_v59 }
 0x5da   :  { %v1052_v62 = vpop.f32.mrf.mxu2 }
 0x5db   :  { %v1053_v2 = vadd.f32 %v1052_v62, %v1023_v63  ;;  %v1263_v62 = vld [vmem:[%s2084_s16 + $0x30] sm:$0xff]  ;;  %v1262_v63 = vld [vmem:[%s2084_s16 + $0x28] sm:$0xff] }
 0x5e2   :  { %v1055_v11 = vpop.f32.mrf.mxu2 }
 0x5f0   :  { %v995_v60 = vpop.f32.mrf.mxu0 }
 0x5f1   :  { %1364 = vmatmul.msk.f32.gmra.mxu0 %vm386_vm14, %v995_v60 }
 0x5f5   :  { %v972_v61 = vpop.f32.mrf.mxu3 }
 0x5f6   :  { %1362 = vmatmul.msk.f32.gmra.mxu3 %vm386_vm14, %v972_v61  ;;  %v1264_v61 = vld [vmem:[%s2084_s16 + $0x38] sm:$0xff] }
 0x5f7   :  { %1280 = vmatpush.msrb.mxu2 %v1264_v61 }
 0x5f8   :  { %v1114_v5 = vpop.f32.mrf.mxu0 }
 0x5f9   :  { %1281 = vmatpush.msrb.mxu2 %v1263_v62 }
 0x5fb   :  { %1282 = vmatpush.msrb.mxu2 %v1262_v63 }
 0x5fd   :  { %v1082_v3 = vpop.f32.mrf.mxu3 }
 0x5fe   :  { %v1088_v4 = vadd.f32 %v1082_v3, %v1053_v2  ;;  %v1261_v2 = vld [vmem:[%s2084_s16 + $0x20] sm:$0xff]  ;;  %v1260_v3 = vld [vmem:[%s2084_s16 + $0x18] sm:$0xff] }
 0x5ff   :  { %1283 = vmatpush.msrb.mxu2 %v1261_v2 }
 0x600   :  { %v1120_v6 = vadd.f32 %v1114_v5, %v1088_v4 }
 0x601   :  { %1284 = vmatpush.msrb.mxu2 %v1260_v3 }
 0x602   :  { %v1122_v16 = vadd.f32 %v1120_v6, %v1790_v0 }
 0x604   :  { %v2006_v7 = vadd.f32 %v1391_v44, %v1122_v16 }
 0x606   :  { %v1132_v8 = vsel %vm167_vm0, %v2006_v7, 0.0 }
 0x607   :  { %1133 = vadd.xlane.f32.xlu1 %v1132_v8 }
 0x650   :  { %v1026_v9 = vpop.f32.mrf.mxu1 }
 0x651   :  { %v1056_v12 = vadd.f32 %v1055_v11, %v1026_v9 }
 0x66e   :  { %v1117_v18 = vpop.f32.mrf.mxu0 }
 0x679   :  { %v1085_v13 = vpop.f32.mrf.mxu3 }
 0x67a   :  { %v1089_v17 = vadd.f32 %v1085_v13, %v1056_v12  ;;  %v1134_v14 = vpop.xlane.xlu1 %1133  ;;  %v1259_v12 = vld [vmem:[%s2084_s16 + $0x10] sm:$0xff] }
 0x67b   :  { %v1138_v15 = vmul.f32 %v1134_v14, %v1798_v10  ;;  %1285 = vmatpush.msrb.mxu2 %v1259_v12 }
 0x67c   :  { %v1121_v19 = vadd.f32 %v1117_v18, %v1089_v17  ;;  %v1258_v17 = vld [vmem:[%s2084_s16 + $0x8] sm:$0xff]  ;;  %v1257_v18 = vld [vmem:[%s2084_s16] sm:$0xff]  ;;  %s1664_s16 = smov [#allocation14]  }
 0x67d   :  { %v1140_v20 = vsub.f32 %v2006_v7, %v1138_v15  ;;  %1286 = vmatpush.msrb.mxu2 %v1258_v17  ;;  %s1309_s30 = sshll.u32 %s1664_s16, 4  ;;  %s1310_s30 = int_to_ptr.vmem [resolvable:$true] %s1309_s30 }
 0x67e   :  { %v1123_v0 = vadd.f32 %v1121_v19, %v1792_v1 }
 0x67f   :  { %v1142_v21 = vmul.f32 %v1140_v20, %v1140_v20  ;;  %1287 = vmatpush.msrb.mxu2 %v1257_v18 }
 0x680   :  { %v2013_v23 = vadd.f32 %v1391_v44, %v1123_v0 }
 0x681   :  { %v1144_v24 = vsel %vm167_vm0, %v1142_v21, 0.0 }
 0x682   :  { %1145 = vadd.xlane.f32.xlu2 %v1144_v24  ;;  %v1135_v25 = vsel %vm167_vm0, %v2013_v23, 0.0 }
 0x683   :  { %1136 = vadd.xlane.f32.xlu0 %v1135_v25 }
 0x6f5   :  { %v1146_v31 = vpop.xlane.xlu2 %1145 }
 0x6f6   :  { %v1150_v22 = vmul.f32 0.032258064, %v1146_v31  ;;  %v1137_v1 = vpop.xlane.xlu0 %1136 }
 0x6f7   :  { %v1139_v33 = vmul.f32 %v1137_v1, %v1798_v10 }
 0x6f8   :  { %1438 = vrsqrt.f32 %v1150_v22  ;;  %vm1159_vm14 = vcmp.eq.f32.partialorder %v1150_v22, inf  ;;  %v1162_v40 = vand.u32 2147483648, %v1150_v22  ;;  %vm1161_vm8 = vcmp.eq.f32.partialorder %v1150_v22, 0.0 }
 0x6f9   :  { %v2020_v34 = vsub.f32 %v2013_v23, %v1139_v33 }
 0x6fb   :  { %v1143_v36 = vmul.f32 %v2020_v34, %v2020_v34 }
 0x6fd   :  { %v1147_v37 = vsel %vm167_vm0, %v1143_v36, 0.0 }
 0x6fe   :  { %v1439_v38 = vpop.eup %1438  ;;  %1148 = vadd.xlane.f32.xlu1 %v1147_v37  ;;  %v1394_v37 = vld [vmem:[#allocation11] ss:$0 sm:$0xff] }
 0x6ff   :  { %v1153_v39 = vmul.f32 %v1439_v38, %v1150_v22 }
 0x701   :  { %v1154_v41 = vmul.f32 %v1439_v38, %v1153_v39 }
 0x703   :  { %v1155_v43 = vmul.f32 0.5, %v1154_v41 }
 0x705   :  { %v1156_v32 = vsub.f32 1.5, %v1155_v43 }
 0x707   :  { %v1157_v45 = vmul.f32 %v1439_v38, %v1156_v32 }
 0x709   :  { %v1158_v46 = vmul.f32 %v1157_v45, %v1150_v22 }
 0x70b   :  { %v1160_v10 = vsel %vm1159_vm14, %v1150_v22, %v1158_v46  ;;  %v1395_v46 = vld [vmem:[#allocation13] ss:$0 sm:$0xff] }
 0x70c   :  { %v1163_v47 = vsel %vm1161_vm8, %v1162_v40, %v1160_v10 }
 0x70d   :  { %v1176_v35 = vadd.f32 1e-06, %v1163_v47 }
 0x70f   :  { %1440 = vrcp.f32 %v1176_v35  ;;  %v1189_v50 = vand.u32 2147483648, %v1176_v35  ;;  %v1187_v52 = vand.u32 2147483647, %v1176_v35  ;;  %vm1183_vm10 = vweird.f32 %v1176_v35 }
 0x711   :  { %v1190_v54 = vor.u32 1.1754944e-38, %v1189_v50  ;;  %vm1188_vm12 = vcmp.eq.f32.partialorder %v1187_v52, 8.507059e+37 }
 0x715   :  { %v1441_v30 = vpop.eup %1440 }
 0x716   :  { %v1179_v48 = vmul.f32 %v1441_v30, %v1176_v35  ;;  %vm1184_vm9 = vweird.f32 %v1441_v30 }
 0x717   :  { %vm1185_vm11 = vmor %vm1183_vm10, %vm1184_vm9 }
 0x718   :  { %v1180_v49 = vsub.f32 1.0, %v1179_v48 }
 0x71a   :  { %v1181_v51 = vmul.f32 %v1441_v30, %v1180_v49 }
 0x71c   :  { %v1182_v53 = vadd.f32 %v1441_v30, %v1181_v51 }
 0x71e   :  { %v1186_v29 = vsel %vm1185_vm11, %v1441_v30, %v1182_v53 }
 0x71f   :  { %v1191_v56 = vsel %vm1188_vm12, %v1190_v54, %v1186_v29 }
 0x720   :  { %v1206_v57 = vmul.f32 %v1191_v56, %v1140_v20 }
 0x722   :  { %v1211_v59 = vmul.f32 %v1392_v55, %v1206_v57 }
 0x724   :  { %v1216_v60 = vadd.f32 %v1393_v58, %v1211_v59 }
 0x726   :  { %1365 = vmatmul.msk.f32.vlgmr.msra.gmra.mxu1 %vm167_vm0, %v1216_v60 }
 0x771   :  { %v1149_v4 = vpop.xlane.xlu1 %1148 }
 0x772   :  { %v1151_v5 = vmul.f32 0.032258064, %v1149_v4 }
 0x774   :  { %1442 = vrsqrt.f32 %v1151_v5  ;;  %vm1171_vm13 = vcmp.eq.f32.partialorder %v1151_v5, inf  ;;  %v1174_v14 = vand.u32 2147483648, %v1151_v5  ;;  %vm1173_vm15 = vcmp.eq.f32.partialorder %v1151_v5, 0.0 }
 0x77a   :  { %v1443_v6 = vpop.eup %1442 }
 0x77b   :  { %v1165_v44 = vmul.f32 %v1443_v6, %v1151_v5 }
 0x77d   :  { %v1166_v16 = vmul.f32 %v1443_v6, %v1165_v44 }
 0x77f   :  { %v1167_v8 = vmul.f32 0.5, %v1166_v16 }
 0x781   :  { %v1168_v9 = vsub.f32 1.5, %v1167_v8 }
 0x783   :  { %v1169_v11 = vmul.f32 %v1443_v6, %v1168_v9 }
 0x785   :  { %v1170_v13 = vmul.f32 %v1169_v11, %v1151_v5 }
 0x787   :  { %v1172_v15 = vsel %vm1171_vm13, %v1151_v5, %v1170_v13 }
 0x788   :  { %v1175_v19 = vsel %vm1173_vm15, %v1174_v14, %v1172_v15 }
 0x789   :  { %v1177_v20 = vadd.f32 1e-06, %v1175_v19 }
 0x78b   :  { %1444 = vrcp.f32 %v1177_v20  ;;  %v1203_v25 = vand.u32 2147483648, %v1177_v20  ;;  %v1201_v27 = vand.u32 2147483647, %v1177_v20  ;;  %vm1197_vm2 = vweird.f32 %v1177_v20 }
 0x78d   :  { %v1204_v42 = vor.u32 1.1754944e-38, %v1203_v25  ;;  %vm1202_vm5 = vcmp.eq.f32.partialorder %v1201_v27, 8.507059e+37 }
 0x791   :  { %v1445_v0 = vpop.eup %1444 }
 0x792   :  { %v1193_v21 = vmul.f32 %v1445_v0, %v1177_v20  ;;  %vm1198_vm1 = vweird.f32 %v1445_v0 }
 0x793   :  { %vm1199_vm4 = vmor %vm1197_vm2, %vm1198_vm1 }
 0x794   :  { %v1194_v24 = vsub.f32 1.0, %v1193_v21 }
 0x796   :  { %v1195_v26 = vmul.f32 %v1445_v0, %v1194_v24 }
 0x798   :  { %v1196_v28 = vadd.f32 %v1445_v0, %v1195_v26 }
 0x79a   :  { %v1200_v31 = vsel %vm1199_vm4, %v1445_v0, %v1196_v28 }
 0x79b   :  { %v1205_v22 = vsel %vm1202_vm5, %v1204_v42, %v1200_v31 }
 0x79c   :  { %v1207_v1 = vmul.f32 %v1205_v22, %v2020_v34 }
 0x79e   :  { %v1212_v33 = vmul.f32 %v1392_v55, %v1207_v1 }
 0x7a0   :  { %v1217_v36 = vadd.f32 %v1393_v58, %v1212_v33 }
 0x7a2   :  { %1366 = vmatmul.msk.f32.gmra.mxu1 %vm167_vm0, %v1217_v36 }
 0x7a3   :  { %v1249_v38 = vpop.f32.mrf.mxu1 }
 0x7a4   :  { %v1250_v39 = vadd.f32 %v1394_v37, %v1249_v38 }
 0x7a6   :  { %v1255_v41 = vmax.f32 %v1250_v39, 0.0 }
 0x7a8   :  { %1367 = vmatmul.msk.f32.vlgmr.msrb.gmra.mxu2 %vm1265_vm6, %v1255_v41 }
 0x81f   :  { %v1252_v43 = vpop.f32.mrf.mxu1 }
 0x820   :  { %v1253_v32 = vadd.f32 %v1394_v37, %v1252_v43 }
 0x822   :  { %v1256_v45 = vmax.f32 %v1253_v32, 0.0 }
 0x824   :  { %1368 = vmatmul.msk.f32.gmra.mxu2 %vm1265_vm6, %v1256_v45 }
 0x82b   :  { %v1289_v40 = vpop.f32.mrf.mxu2 }
 0x82c   :  { %v1295_v10 = vadd.f32 %v1289_v40, %v2006_v7 }
 0x82e   :  { %v1301_v47 = vadd.f32 %v1395_v46, %v1295_v10 }
 0x830   :  { %1303 = vst.msk [vmem:[#allocation14] sm:$0xff] %vm167_vm0, %v1301_v47 }
 0x8a7   :  { %v1292_v34 = vpop.f32.mrf.mxu2 }
 0x8a8   :  { %v1296_v35 = vadd.f32 %v1292_v34, %v2013_v23 }
 0x8aa   :  { %v1302_v30 = vadd.f32 %v1395_v46, %v1296_v35 }
 0x8ac   :  { %1304 = vst.msk [vmem:[#allocation14 + $0x8] sm:$0xff] %vm167_vm0, %v1302_v30 }
 0x8ad   :  { %1317 = dma.vmem_to_hbm [thread:$0]  %s1310_s30, 256, %s1312_s19, [#allocation4], %s1652_s28, %s1652_s28, %s1653_s29  }
 0x8ae   :  { %1646 = dma.done.wait [#allocation4], 256  }
 0x8af   :  { %1647 = vsyncadd [#allocation4], 4294967040 }
 0x8b0   :  { %1322 = vsyncpa [#allocation3], 1 }
 0x8b1   :  { %1323 = vsyncpa [#allocation6], 1 }
 0x8b2   :  { %1324 = vsyncpa [#allocation9], 1 }
 0x8b3   :  { %1325 = vsyncpa [#allocation12], 1 }
 0x8b4   :  { %1326 = vsyncpa [#allocation4], 1 }

</bundles_post_ra>
